<compile_context>
chip_gen: v6e
topology: v6e:2x2x1
jax: 0.10.0
libtpu: 0.0.40
codegen_flags: <defaults>
</compile_context>

<pallas_src>
import functools
import math

import jax
import jax.numpy as jnp
from jax.experimental import pallas as pl
from jax.experimental.pallas import tpu as pltpu

LN_EPS = 1e-5


def fused_decoder_kernel(mask_ref, x_ref,
                         ln1_g, ln1_b,
                         wq, bq, wk, bk, wv, bv, wo, bo,
                         ln2_g, ln2_b,
                         w1, b1, w2, b2,
                         out_ref,
                         x_acc,
                         *, num_heads):
    """One layer step of the fused decoder stack (whole batch per step).

    x_ref:   (B, T, D)   input activations (consumed only at layer 0)
    weights: (1, D, D) / (1, D, F) / (1, F, D) bf16 blocks for this layer
    biases / LN params: (1, 1, D) or (1, 1, F) f32 blocks
    out_ref: (1, B, T, D) inner-state slot for this layer
    x_acc:   (B, T, D) f32 VMEM scratch carrying x across the layer axis
    """
    layer = pl.program_id(0)

    @pl.when(layer == 0)
    def _():
        x_acc[...] = x_ref[...].astype(jnp.float32)

    B, T, D = x_acc.shape
    H = num_heads
    hd = D // H
    scale = 1.0 / math.sqrt(hd)

    x = x_acc[...]                      # (B, T, D) f32
    xf = x.reshape(B * T, D)            # flatten batch+time for dense matmuls

    def layer_norm(h, g_ref, b_ref):
        mu = jnp.mean(h, axis=-1, keepdims=True)
        var = jnp.mean(jnp.square(h - mu), axis=-1, keepdims=True)
        return (h - mu) * jax.lax.rsqrt(var + LN_EPS) * g_ref[0] + b_ref[0]

    mask = mask_ref[...]                # (T, T) additive causal mask, hoisted

    # ---------------- self-attention block (pre-LN) ----------------
    h = layer_norm(xf, ln1_g, ln1_b)
    hb = h.astype(jnp.bfloat16)
    # scale applied after in_proj (incl. bias), matching nn.MultiheadAttention
    q = (jnp.dot(hb, wq[0], preferred_element_type=jnp.float32) + bq[0]) * scale
    k = jnp.dot(hb, wk[0], preferred_element_type=jnp.float32) + bk[0]
    v = jnp.dot(hb, wv[0], preferred_element_type=jnp.float32) + bv[0]

    attn_rows = []
    for b in range(B):                  # static unroll over the small batch
        qb = q[b * T:(b + 1) * T].reshape(T, H, hd).astype(jnp.bfloat16)
        kb = k[b * T:(b + 1) * T].reshape(T, H, hd).astype(jnp.bfloat16)
        vb = v[b * T:(b + 1) * T].reshape(T, H, hd).astype(jnp.bfloat16)

        # all heads in one batched contraction: (H, T, T) f32 scores
        s = jnp.einsum('qhd,khd->hqk', qb, kb,
                       preferred_element_type=jnp.float32)
        s = s + mask[None, :, :]
        m = jnp.max(s, axis=-1, keepdims=True)
        p = jnp.exp(s - m)                              # unnormalized probs
        lsum = jnp.sum(p, axis=-1, keepdims=True)       # (H, T, 1)

        # PV on unnormalized bf16 probs, normalize once afterwards
        o3 = jnp.einsum('hqk,khd->qhd', p.astype(jnp.bfloat16), vb,
                        preferred_element_type=jnp.float32)   # (T, H, hd) f32
        inv_l = pl.reciprocal(lsum, approx=True)              # (H, T, 1)
        inv_l = jnp.transpose(inv_l, (1, 0, 2))               # (T, H, 1)
        attn_rows.append((o3 * inv_l).reshape(T, D))

    attn = jnp.concatenate(attn_rows, axis=0)                 # (B*T, D)
    attn = jnp.dot(attn.astype(jnp.bfloat16), wo[0],
                   preferred_element_type=jnp.float32) + bo[0]
    xf = xf + attn                                            # residual (f32)

    # ---------------- feed-forward block (pre-LN) ----------------
    h2 = layer_norm(xf, ln2_g, ln2_b)
    ff = jnp.dot(h2.astype(jnp.bfloat16), w1[0],
                 preferred_element_type=jnp.float32) + b1[0]
    ff = jnp.maximum(ff, 0.0)                                 # ReLU
    ff = jnp.dot(ff.astype(jnp.bfloat16), w2[0],
                 preferred_element_type=jnp.float32) + b2[0]
    xf = xf + ff                                              # residual

    x_new = xf.reshape(B, T, D)
    x_acc[...] = x_new
    out_ref[0] = x_new.astype(out_ref.dtype)


def transformer_decoder_multilayer_block(x_tbd, layer_params, num_heads):
    """Mirror of TransformerDecoderMultiLayerBlockModule.forward.

    x_tbd: (T, B, D) like the PyTorch module.
    Returns (x, layer_attn, inner_states, l_aux).
    """
    T, B, D = x_tbd.shape
    L = len(layer_params)
    F = layer_params[0]["w1"].shape[1]

    x_btd = jnp.transpose(x_tbd, (1, 0, 2))  # (B, T, D) for the kernel

    def stack(name, dtype=None):
        a = jnp.stack([p[name] for p in layer_params])  # leading layer axis
        return a.astype(dtype) if dtype is not None else a

    # matmul weights as bf16 (halves VMEM/HBM weight traffic, higher MXU rate);
    # biases / LN params stay f32 (added in f32).
    wq = stack("wq", jnp.bfloat16); wk = stack("wk", jnp.bfloat16)
    wv = stack("wv", jnp.bfloat16); wo = stack("wo", jnp.bfloat16)
    w1 = stack("w1", jnp.bfloat16); w2 = stack("w2", jnp.bfloat16)
    bq = stack("bq"); bk = stack("bk"); bv = stack("bv"); bo = stack("bo")
    b1 = stack("b1"); b2 = stack("b2")
    ln1_g = stack("ln1_g"); ln1_b = stack("ln1_b")
    ln2_g = stack("ln2_g"); ln2_b = stack("ln2_b")

    # additive causal mask, built once on the host
    row = jnp.arange(T)[:, None]
    col = jnp.arange(T)[None, :]
    mask = jnp.where(row >= col, 0.0, -1e30).astype(jnp.float32)

    def wspec(shape):
        nd = len(shape)
        return pl.BlockSpec((1,) + shape, lambda l, _nd=nd: (l,) + (0,) * _nd)

    in_specs = [
        pl.BlockSpec((T, T), lambda l: (0, 0)),         # causal mask (constant)
        pl.BlockSpec((B, T, D), lambda l: (0, 0, 0)),   # x (used at layer 0)
        wspec((1, D)), wspec((1, D)),                   # ln1 gamma/beta
        wspec((D, D)), wspec((1, D)),                   # q
        wspec((D, D)), wspec((1, D)),                   # k
        wspec((D, D)), wspec((1, D)),                   # v
        wspec((D, D)), wspec((1, D)),                   # out_proj
        wspec((1, D)), wspec((1, D)),                   # ln2 gamma/beta
        wspec((D, F)), wspec((1, F)),                   # fc1
        wspec((F, D)), wspec((1, D)),                   # fc2
    ]

    kernel = functools.partial(fused_decoder_kernel, num_heads=num_heads)
    inner_all = pl.pallas_call(
        kernel,
        out_shape=jax.ShapeDtypeStruct((L, B, T, D), x_tbd.dtype),
        grid=(L,),
        in_specs=in_specs,
        out_specs=pl.BlockSpec((1, B, T, D), lambda l: (l, 0, 0, 0)),
        scratch_shapes=[pltpu.VMEM((B, T, D), jnp.float32)],
        compiler_params=pltpu.CompilerParams(
            dimension_semantics=("arbitrary",),      # x_acc carried across layers
            vmem_limit_bytes=32 * 1024 * 1024),
    )(mask, x_btd,
      ln1_g, ln1_b,
      wq, bq, wk, bk, wv, bv, wo, bo,
      ln2_g, ln2_b,
      w1, b1, w2, b2)

    # (L, B, T, D) -> list of (T, B, D), one per layer (post-layer outputs)
    inner_states = [jnp.transpose(inner_all[i], (1, 0, 2)) for i in range(L)]
    l_aux = []            # reference code never appends to it
    layer_attn = None     # need_attn=False default -> attn is None
    x_out = inner_states[-1]
    return x_out, layer_attn, inner_states, l_aux


def init_layer_params(key, D, F):
    ks = jax.random.split(key, 12)
    s = 0.02
    n = lambda k, shape: (jax.random.normal(k, shape, jnp.float32) * s)
    return {
        "ln1_g": jnp.ones((1, D), jnp.float32),
        "ln1_b": jnp.zeros((1, D), jnp.float32),
        "wq": n(ks[0], (D, D)), "bq": n(ks[1], (1, D)),
        "wk": n(ks[2], (D, D)), "bk": n(ks[3], (1, D)),
        "wv": n(ks[4], (D, D)), "bv": n(ks[5], (1, D)),
        "wo": n(ks[6], (D, D)), "bo": n(ks[7], (1, D)),
        "ln2_g": jnp.ones((1, D), jnp.float32),
        "ln2_b": jnp.zeros((1, D), jnp.float32),
        "w1": n(ks[8], (D, F)), "b1": n(ks[9], (1, F)),
        "w2": n(ks[10], (F, D)), "b2": n(ks[11], (1, D)),
    }


def _reference_inner_states(x_tbd, layer_params, num_heads):
    """Pure-JAX f32 reference of the same forward (for a sanity check)."""
    T, B, D = x_tbd.shape
    H = num_heads
    hd = D // H
    scale = 1.0 / math.sqrt(hd)
    x = jnp.transpose(x_tbd, (1, 0, 2))  # (B, T, D)
    mask = jnp.where(jnp.arange(T)[:, None] >= jnp.arange(T)[None, :],
                     0.0, -1e30).astype(jnp.float32)

    def ln(h, g, b):
        mu = jnp.mean(h, axis=-1, keepdims=True)
        var = jnp.mean(jnp.square(h - mu), axis=-1, keepdims=True)
        return (h - mu) * jax.lax.rsqrt(var + LN_EPS) * g + b

    inner = []
    for p in layer_params:
        h = ln(x, p["ln1_g"][0], p["ln1_b"][0])
        q = (h @ p["wq"] + p["bq"][0]) * scale
        k = h @ p["wk"] + p["bk"][0]
        v = h @ p["wv"] + p["bv"][0]
        q = q.reshape(B, T, H, hd)
        k = k.reshape(B, T, H, hd)
        v = v.reshape(B, T, H, hd)
        s = jnp.einsum('bqhd,bkhd->bhqk', q, k) + mask[None, None]
        a = jax.nn.softmax(s, axis=-1)
        o = jnp.einsum('bhqk,bkhd->bqhd', a, v).reshape(B, T, D)
        x = x + (o @ p["wo"] + p["bo"][0])
        h2 = ln(x, p["ln2_g"][0], p["ln2_b"][0])
        ff = jnp.maximum(h2 @ p["w1"] + p["b1"][0], 0.0)
        x = x + (ff @ p["w2"] + p["b2"][0])
        inner.append(jnp.transpose(x, (1, 0, 2)))
    return inner


if __name__ == "__main__":
    T, B, D, H, F = 8, 2, 32, 4, 64
    NUM_LAYERS = 2

    key = jax.random.PRNGKey(0)
    kx, kp = jax.random.split(key)
    x = jax.random.normal(kx, (T, B, D), jnp.float32)
    layer_keys = jax.random.split(kp, NUM_LAYERS)
    params = [init_layer_params(k, D, F) for k in layer_keys]

    out, layer_attn, inner_states, l_aux = transformer_decoder_multilayer_block(
        x, params, num_heads=H)

    jax.block_until_ready(out)
    for s in inner_states:
        jax.block_until_ready(s)

    assert out.shape == (T, B, D)
    assert len(inner_states) == NUM_LAYERS
    assert all(s.shape == (T, B, D) for s in inner_states)
    assert layer_attn is None and l_aux == []

    # numerical sanity check vs. a pure-JAX f32 reference (loose tolerance
    # because the kernel runs matmuls in bf16)
    ref_inner = _reference_inner_states(x, params, num_heads=H)
    for got, want in zip(inner_states, ref_inner):
        assert jnp.allclose(got, want, rtol=2e-2, atol=2e-2), (
            float(jnp.max(jnp.abs(got - want))))

    print("KERNEL_OK")
</pallas_src>

<mosaic_0001>
module attributes {stable_mosaic.version = 11 : i64} {
  func.func @fused_decoder_kernel(%arg0: i32, %arg1: memref<8x8xf32, #tpu.memory_space<vmem>>, %arg2: memref<2x8x32xf32, #tpu.memory_space<vmem>>, %arg3: memref<1x1x32xf32, #tpu.memory_space<vmem>>, %arg4: memref<1x1x32xf32, #tpu.memory_space<vmem>>, %arg5: memref<1x32x32xbf16, #tpu.memory_space<vmem>>, %arg6: memref<1x1x32xf32, #tpu.memory_space<vmem>>, %arg7: memref<1x32x32xbf16, #tpu.memory_space<vmem>>, %arg8: memref<1x1x32xf32, #tpu.memory_space<vmem>>, %arg9: memref<1x32x32xbf16, #tpu.memory_space<vmem>>, %arg10: memref<1x1x32xf32, #tpu.memory_space<vmem>>, %arg11: memref<1x32x32xbf16, #tpu.memory_space<vmem>>, %arg12: memref<1x1x32xf32, #tpu.memory_space<vmem>>, %arg13: memref<1x1x32xf32, #tpu.memory_space<vmem>>, %arg14: memref<1x1x32xf32, #tpu.memory_space<vmem>>, %arg15: memref<1x32x64xbf16, #tpu.memory_space<vmem>>, %arg16: memref<1x1x64xf32, #tpu.memory_space<vmem>>, %arg17: memref<1x64x32xbf16, #tpu.memory_space<vmem>>, %arg18: memref<1x1x32xf32, #tpu.memory_space<vmem>>, %arg19: memref<1x2x8x32xf32, #tpu.memory_space<vmem>>, %arg20: memref<2x8x32xf32, #tpu.memory_space<vmem>>) attributes {dimension_semantics = [#tpu.dimension_semantics<arbitrary>], iteration_bounds = array<i64: 2>, scalar_prefetch = 0 : i64, scratch_operands = 1 : i64, tpu.core_type = #tpu.core_type<tc>, window_params = [{pipeline_mode = #tpu.pipeline_mode<synchronous>, transform_indices = @transform_0, window_bounds = array<i64: 8, 8>}, {pipeline_mode = #tpu.pipeline_mode<synchronous>, transform_indices = @transform_1, window_bounds = array<i64: 2, 8, 32>}, {transform_indices = @transform_2, window_bounds = array<i64: 1, 1, 32>}, {transform_indices = @transform_3, window_bounds = array<i64: 1, 1, 32>}, {transform_indices = @transform_4, window_bounds = array<i64: 1, 32, 32>}, {transform_indices = @transform_5, window_bounds = array<i64: 1, 1, 32>}, {transform_indices = @transform_6, window_bounds = array<i64: 1, 32, 32>}, {transform_indices = @transform_7, window_bounds = array<i64: 1, 1, 32>}, {transform_indices = @transform_8, window_bounds = array<i64: 1, 32, 32>}, {transform_indices = @transform_9, window_bounds = array<i64: 1, 1, 32>}, {transform_indices = @transform_10, window_bounds = array<i64: 1, 32, 32>}, {transform_indices = @transform_11, window_bounds = array<i64: 1, 1, 32>}, {transform_indices = @transform_12, window_bounds = array<i64: 1, 1, 32>}, {transform_indices = @transform_13, window_bounds = array<i64: 1, 1, 32>}, {transform_indices = @transform_14, window_bounds = array<i64: 1, 32, 64>}, {transform_indices = @transform_15, window_bounds = array<i64: 1, 1, 64>}, {transform_indices = @transform_16, window_bounds = array<i64: 1, 64, 32>}, {transform_indices = @transform_17, window_bounds = array<i64: 1, 1, 32>}, {transform_indices = @transform_18, window_bounds = array<i64: 1, 2, 8, 32>}]} {
    %c0_i32 = arith.constant 0 : i32
    %0 = arith.cmpi eq, %arg0, %c0_i32 : i32
    %1 = arith.extui %0 : i1 to i32
    %c0_i32_0 = arith.constant 0 : i32
    %2 = arith.cmpi ne, %1, %c0_i32_0 : i32
    scf.if %2 {
      %c0_85 = arith.constant 0 : index
      %c0_86 = arith.constant 0 : index
      %c0_87 = arith.constant 0 : index
      %172 = vector.load %arg2[%c0_85, %c0_86, %c0_87] : memref<2x8x32xf32, #tpu.memory_space<vmem>>, vector<2x8x32xf32>
      %c0_88 = arith.constant 0 : index
      %c0_89 = arith.constant 0 : index
      %c0_90 = arith.constant 0 : index
      %173 = vector.load %arg20[%c0_88, %c0_89, %c0_90] : memref<2x8x32xf32, #tpu.memory_space<vmem>>, vector<2x8x32xf32>
      tpu.vector_store %arg20[%c0_88, %c0_89, %c0_90], %172 {strides = array<i32>} : memref<2x8x32xf32, #tpu.memory_space<vmem>>, vector<2x8x32xf32>,
    } else {
    }
    %c0 = arith.constant 0 : index
    %c0_1 = arith.constant 0 : index
    %c0_2 = arith.constant 0 : index
    %3 = vector.load %arg20[%c0, %c0_1, %c0_2] : memref<2x8x32xf32, #tpu.memory_space<vmem>>, vector<2x8x32xf32>
    %4 = vector.shape_cast %3 : vector<2x8x32xf32> to vector<16x32xf32>
    %c0_3 = arith.constant 0 : index
    %c0_4 = arith.constant 0 : index
    %5 = vector.load %arg1[%c0_3, %c0_4] : memref<8x8xf32, #tpu.memory_space<vmem>>, vector<8x8xf32>
    %cst = arith.constant dense<0.000000e+00> : vector<16xf32>
    %6 = vector.multi_reduction <add>, %4, %cst [1] : vector<16x32xf32> to vector<16xf32>
    %7 = vector.shape_cast %6 : vector<16xf32> to vector<16x1xf32>
    %cst_5 = arith.constant 3.200000e+01 : f32
    %8 = vector.broadcast %cst_5 : f32 to vector<16x1xf32>
    %9 = arith.divf %7, %8 : vector<16x1xf32>
    %10 = vector.broadcast %9 : vector<16x1xf32> to vector<16x32xf32>
    %11 = arith.subf %4, %10 : vector<16x32xf32>
    %12 = arith.mulf %11, %11 : vector<16x32xf32>
    %cst_6 = arith.constant dense<0.000000e+00> : vector<16xf32>
    %13 = vector.multi_reduction <add>, %12, %cst_6 [1] : vector<16x32xf32> to vector<16xf32>
    %14 = vector.shape_cast %13 : vector<16xf32> to vector<16x1xf32>
    %cst_7 = arith.constant 3.200000e+01 : f32
    %15 = vector.broadcast %cst_7 : f32 to vector<16x1xf32>
    %16 = arith.divf %14, %15 : vector<16x1xf32>
    %17 = vector.broadcast %9 : vector<16x1xf32> to vector<16x32xf32>
    %18 = arith.subf %4, %17 : vector<16x32xf32>
    %cst_8 = arith.constant 9.99999974E-6 : f32
    %19 = vector.broadcast %cst_8 : f32 to vector<16x1xf32>
    %20 = arith.addf %16, %19 : vector<16x1xf32>
    %21 = math.rsqrt %20 : vector<16x1xf32>
    %22 = vector.broadcast %21 : vector<16x1xf32> to vector<16x32xf32>
    %23 = arith.mulf %18, %22 : vector<16x32xf32>
    %c0_9 = arith.constant 0 : index
    %c0_10 = arith.constant 0 : index
    %c0_11 = arith.constant 0 : index
    %24 = vector.load %arg3[%c0_9, %c0_10, %c0_11] : memref<1x1x32xf32, #tpu.memory_space<vmem>>, vector<1x1x32xf32>
    %25 = vector.shape_cast %24 : vector<1x1x32xf32> to vector<1x32xf32>
    %26 = vector.broadcast %25 : vector<1x32xf32> to vector<16x32xf32>
    %27 = arith.mulf %23, %26 : vector<16x32xf32>
    %c0_12 = arith.constant 0 : index
    %c0_13 = arith.constant 0 : index
    %c0_14 = arith.constant 0 : index
    %28 = vector.load %arg4[%c0_12, %c0_13, %c0_14] : memref<1x1x32xf32, #tpu.memory_space<vmem>>, vector<1x1x32xf32>
    %29 = vector.shape_cast %28 : vector<1x1x32xf32> to vector<1x32xf32>
    %30 = vector.broadcast %29 : vector<1x32xf32> to vector<16x32xf32>
    %31 = arith.addf %27, %30 : vector<16x32xf32>
    %32 = arith.truncf %31 : vector<16x32xf32> to vector<16x32xbf16>
    %c0_15 = arith.constant 0 : index
    %c0_16 = arith.constant 0 : index
    %c0_17 = arith.constant 0 : index
    %33 = vector.load %arg5[%c0_15, %c0_16, %c0_17] : memref<1x32x32xbf16, #tpu.memory_space<vmem>>, vector<1x32x32xbf16>
    %34 = vector.shape_cast %33 : vector<1x32x32xbf16> to vector<32x32xbf16>
    %cst_18 = arith.constant dense<0.000000e+00> : vector<16x32xf32>
    %35 = tpu.matmul %32, %34, %cst_18 {dimension_numbers = #tpu.dot_dimension_numbers<[1], [0], [0], [1], [0, 0, 1, 1], [], []>} : vector<16x32xbf16>, vector<32x32xbf16>, vector<16x32xf32> -> vector<16x32xf32>
    %c0_19 = arith.constant 0 : index
    %c0_20 = arith.constant 0 : index
    %c0_21 = arith.constant 0 : index
    %36 = vector.load %arg6[%c0_19, %c0_20, %c0_21] : memref<1x1x32xf32, #tpu.memory_space<vmem>>, vector<1x1x32xf32>
    %37 = vector.shape_cast %36 : vector<1x1x32xf32> to vector<1x32xf32>
    %38 = vector.broadcast %37 : vector<1x32xf32> to vector<16x32xf32>
    %39 = arith.addf %35, %38 : vector<16x32xf32>
    %cst_22 = arith.constant 0.353553385 : f32
    %40 = vector.broadcast %cst_22 : f32 to vector<16x32xf32>
    %41 = arith.mulf %39, %40 : vector<16x32xf32>
    %c0_23 = arith.constant 0 : index
    %c0_24 = arith.constant 0 : index
    %c0_25 = arith.constant 0 : index
    %42 = vector.load %arg7[%c0_23, %c0_24, %c0_25] : memref<1x32x32xbf16, #tpu.memory_space<vmem>>, vector<1x32x32xbf16>
    %43 = vector.shape_cast %42 : vector<1x32x32xbf16> to vector<32x32xbf16>
    %cst_26 = arith.constant dense<0.000000e+00> : vector<16x32xf32>
    %44 = tpu.matmul %32, %43, %cst_26 {dimension_numbers = #tpu.dot_dimension_numbers<[1], [0], [0], [1], [0, 0, 1, 1], [], []>} : vector<16x32xbf16>, vector<32x32xbf16>, vector<16x32xf32> -> vector<16x32xf32>
    %c0_27 = arith.constant 0 : index
    %c0_28 = arith.constant 0 : index
    %c0_29 = arith.constant 0 : index
    %45 = vector.load %arg8[%c0_27, %c0_28, %c0_29] : memref<1x1x32xf32, #tpu.memory_space<vmem>>, vector<1x1x32xf32>
    %46 = vector.shape_cast %45 : vector<1x1x32xf32> to vector<1x32xf32>
    %47 = vector.broadcast %46 : vector<1x32xf32> to vector<16x32xf32>
    %48 = arith.addf %44, %47 : vector<16x32xf32>
    %c0_30 = arith.constant 0 : index
    %c0_31 = arith.constant 0 : index
    %c0_32 = arith.constant 0 : index
    %49 = vector.load %arg9[%c0_30, %c0_31, %c0_32] : memref<1x32x32xbf16, #tpu.memory_space<vmem>>, vector<1x32x32xbf16>
    %50 = vector.shape_cast %49 : vector<1x32x32xbf16> to vector<32x32xbf16>
    %cst_33 = arith.constant dense<0.000000e+00> : vector<16x32xf32>
    %51 = tpu.matmul %32, %50, %cst_33 {dimension_numbers = #tpu.dot_dimension_numbers<[1], [0], [0], [1], [0, 0, 1, 1], [], []>} : vector<16x32xbf16>, vector<32x32xbf16>, vector<16x32xf32> -> vector<16x32xf32>
    %c0_34 = arith.constant 0 : index
    %c0_35 = arith.constant 0 : index
    %c0_36 = arith.constant 0 : index
    %52 = vector.load %arg10[%c0_34, %c0_35, %c0_36] : memref<1x1x32xf32, #tpu.memory_space<vmem>>, vector<1x1x32xf32>
    %53 = vector.shape_cast %52 : vector<1x1x32xf32> to vector<1x32xf32>
    %54 = vector.broadcast %53 : vector<1x32xf32> to vector<16x32xf32>
    %55 = arith.addf %51, %54 : vector<16x32xf32>
    %56 = vector.extract_strided_slice %41 {offsets = [0, 0], sizes = [8, 32], strides = [1, 1]} : vector<16x32xf32> to vector<8x32xf32>
    %57 = vector.shape_cast %56 : vector<8x32xf32> to vector<8x4x8xf32>
    %58 = arith.truncf %57 : vector<8x4x8xf32> to vector<8x4x8xbf16>
    %59 = vector.extract_strided_slice %48 {offsets = [0, 0], sizes = [8, 32], strides = [1, 1]} : vector<16x32xf32> to vector<8x32xf32>
    %60 = vector.shape_cast %59 : vector<8x32xf32> to vector<8x4x8xf32>
    %61 = arith.truncf %60 : vector<8x4x8xf32> to vector<8x4x8xbf16>
    %62 = vector.extract_strided_slice %55 {offsets = [0, 0], sizes = [8, 32], strides = [1, 1]} : vector<16x32xf32> to vector<8x32xf32>
    %63 = vector.shape_cast %62 : vector<8x32xf32> to vector<8x4x8xf32>
    %64 = arith.truncf %63 : vector<8x4x8xf32> to vector<8x4x8xbf16>
    "tpu.trace_start"() <{level = 10 : i32, message = "qhd,khd->hqk"}> : () -> ()
    %cst_37 = arith.constant dense<0.000000e+00> : vector<4x8x8xf32>
    %65 = tpu.matmul %58, %61, %cst_37 {dimension_numbers = #tpu.dot_dimension_numbers<[2], [2], [0], [0], [0, 1, 0, 0, 1, 0], [1], [1]>} : vector<8x4x8xbf16>, vector<8x4x8xbf16>, vector<4x8x8xf32> -> vector<4x8x8xf32>
    "tpu.trace_stop"() : () -> ()
    %66 = vector.shape_cast %5 : vector<8x8xf32> to vector<1x8x8xf32>
    %67 = vector.broadcast %66 : vector<1x8x8xf32> to vector<4x8x8xf32>
    %68 = arith.addf %65, %67 : vector<4x8x8xf32>
    %cst_38 = arith.constant dense<0xFF800000> : vector<4x8xf32>
    %69 = vector.multi_reduction <maximumf>, %68, %cst_38 [2] : vector<4x8x8xf32> to vector<4x8xf32>
    %70 = vector.shape_cast %69 : vector<4x8xf32> to vector<4x8x1xf32>
    %71 = vector.broadcast %70 : vector<4x8x1xf32> to vector<4x8x8xf32>
    %72 = arith.subf %68, %71 : vector<4x8x8xf32>
    %73 = math.exp %72 : vector<4x8x8xf32>
    %cst_39 = arith.constant dense<0.000000e+00> : vector<4x8xf32>
    %74 = vector.multi_reduction <add>, %73, %cst_39 [2] : vector<4x8x8xf32> to vector<4x8xf32>
    %75 = vector.shape_cast %74 : vector<4x8xf32> to vector<4x8x1xf32>
    %76 = arith.truncf %73 : vector<4x8x8xf32> to vector<4x8x8xbf16>
    "tpu.trace_start"() <{level = 10 : i32, message = "hqk,khd->qhd"}> : () -> ()
    %cst_40 = arith.constant dense<0.000000e+00> : vector<4x8x8xf32>
    %77 = tpu.matmul %64, %76, %cst_40 {dimension_numbers = #tpu.dot_dimension_numbers<[0], [2], [2], [1], [0, 1, 0, 2, 1, 1], [1], [0]>} : vector<8x4x8xbf16>, vector<4x8x8xbf16>, vector<4x8x8xf32> -> vector<4x8x8xf32>
    %78 = tpu.transpose %77, [2, 0, 1] : vector<4x8x8xf32> -> vector<8x4x8xf32>
    "tpu.trace_stop"() : () -> ()
    %79 = tpu.reciprocal %75 {approx = true} : vector<4x8x1xf32> -> vector<4x8x1xf32>
    %80 = tpu.transpose %79, [1, 0, 2] : vector<4x8x1xf32> -> vector<8x4x1xf32>
    %81 = vector.broadcast %80 : vector<8x4x1xf32> to vector<8x4x8xf32>
    %82 = arith.mulf %78, %81 : vector<8x4x8xf32>
    %83 = vector.shape_cast %82 : vector<8x4x8xf32> to vector<8x32xf32>
    %84 = vector.extract_strided_slice %41 {offsets = [8, 0], sizes = [8, 32], strides = [1, 1]} : vector<16x32xf32> to vector<8x32xf32>
    %85 = vector.shape_cast %84 : vector<8x32xf32> to vector<8x4x8xf32>
    %86 = arith.truncf %85 : vector<8x4x8xf32> to vector<8x4x8xbf16>
    %87 = vector.extract_strided_slice %48 {offsets = [8, 0], sizes = [8, 32], strides = [1, 1]} : vector<16x32xf32> to vector<8x32xf32>
    %88 = vector.shape_cast %87 : vector<8x32xf32> to vector<8x4x8xf32>
    %89 = arith.truncf %88 : vector<8x4x8xf32> to vector<8x4x8xbf16>
    %90 = vector.extract_strided_slice %55 {offsets = [8, 0], sizes = [8, 32], strides = [1, 1]} : vector<16x32xf32> to vector<8x32xf32>
    %91 = vector.shape_cast %90 : vector<8x32xf32> to vector<8x4x8xf32>
    %92 = arith.truncf %91 : vector<8x4x8xf32> to vector<8x4x8xbf16>
    "tpu.trace_start"() <{level = 10 : i32, message = "qhd,khd->hqk"}> : () -> ()
    %cst_41 = arith.constant dense<0.000000e+00> : vector<4x8x8xf32>
    %93 = tpu.matmul %86, %89, %cst_41 {dimension_numbers = #tpu.dot_dimension_numbers<[2], [2], [0], [0], [0, 1, 0, 0, 1, 0], [1], [1]>} : vector<8x4x8xbf16>, vector<8x4x8xbf16>, vector<4x8x8xf32> -> vector<4x8x8xf32>
    "tpu.trace_stop"() : () -> ()
    %94 = vector.shape_cast %5 : vector<8x8xf32> to vector<1x8x8xf32>
    %95 = vector.broadcast %94 : vector<1x8x8xf32> to vector<4x8x8xf32>
    %96 = arith.addf %93, %95 : vector<4x8x8xf32>
    %cst_42 = arith.constant dense<0xFF800000> : vector<4x8xf32>
    %97 = vector.multi_reduction <maximumf>, %96, %cst_42 [2] : vector<4x8x8xf32> to vector<4x8xf32>
    %98 = vector.shape_cast %97 : vector<4x8xf32> to vector<4x8x1xf32>
    %99 = vector.broadcast %98 : vector<4x8x1xf32> to vector<4x8x8xf32>
    %100 = arith.subf %96, %99 : vector<4x8x8xf32>
    %101 = math.exp %100 : vector<4x8x8xf32>
    %cst_43 = arith.constant dense<0.000000e+00> : vector<4x8xf32>
    %102 = vector.multi_reduction <add>, %101, %cst_43 [2] : vector<4x8x8xf32> to vector<4x8xf32>
    %103 = vector.shape_cast %102 : vector<4x8xf32> to vector<4x8x1xf32>
    %104 = arith.truncf %101 : vector<4x8x8xf32> to vector<4x8x8xbf16>
    "tpu.trace_start"() <{level = 10 : i32, message = "hqk,khd->qhd"}> : () -> ()
    %cst_44 = arith.constant dense<0.000000e+00> : vector<4x8x8xf32>
    %105 = tpu.matmul %92, %104, %cst_44 {dimension_numbers = #tpu.dot_dimension_numbers<[0], [2], [2], [1], [0, 1, 0, 2, 1, 1], [1], [0]>} : vector<8x4x8xbf16>, vector<4x8x8xbf16>, vector<4x8x8xf32> -> vector<4x8x8xf32>
    %106 = tpu.transpose %105, [2, 0, 1] : vector<4x8x8xf32> -> vector<8x4x8xf32>
    "tpu.trace_stop"() : () -> ()
    %107 = tpu.reciprocal %103 {approx = true} : vector<4x8x1xf32> -> vector<4x8x1xf32>
    %108 = tpu.transpose %107, [1, 0, 2] : vector<4x8x1xf32> -> vector<8x4x1xf32>
    %109 = vector.broadcast %108 : vector<8x4x1xf32> to vector<8x4x8xf32>
    %110 = arith.mulf %106, %109 : vector<8x4x8xf32>
    %111 = vector.shape_cast %110 : vector<8x4x8xf32> to vector<8x32xf32>
    %112 = tpu.concatenate %83, %111 in 0 : vector<8x32xf32>, vector<8x32xf32> -> vector<16x32xf32>
    %113 = arith.truncf %112 : vector<16x32xf32> to vector<16x32xbf16>
    %c0_45 = arith.constant 0 : index
    %c0_46 = arith.constant 0 : index
    %c0_47 = arith.constant 0 : index
    %114 = vector.load %arg11[%c0_45, %c0_46, %c0_47] : memref<1x32x32xbf16, #tpu.memory_space<vmem>>, vector<1x32x32xbf16>
    %115 = vector.shape_cast %114 : vector<1x32x32xbf16> to vector<32x32xbf16>
    %cst_48 = arith.constant dense<0.000000e+00> : vector<16x32xf32>
    %116 = tpu.matmul %113, %115, %cst_48 {dimension_numbers = #tpu.dot_dimension_numbers<[1], [0], [0], [1], [0, 0, 1, 1], [], []>} : vector<16x32xbf16>, vector<32x32xbf16>, vector<16x32xf32> -> vector<16x32xf32>
    %c0_49 = arith.constant 0 : index
    %c0_50 = arith.constant 0 : index
    %c0_51 = arith.constant 0 : index
    %117 = vector.load %arg12[%c0_49, %c0_50, %c0_51] : memref<1x1x32xf32, #tpu.memory_space<vmem>>, vector<1x1x32xf32>
    %118 = vector.shape_cast %117 : vector<1x1x32xf32> to vector<1x32xf32>
    %119 = vector.broadcast %118 : vector<1x32xf32> to vector<16x32xf32>
    %120 = arith.addf %116, %119 : vector<16x32xf32>
    %121 = arith.addf %4, %120 : vector<16x32xf32>
    %cst_52 = arith.constant dense<0.000000e+00> : vector<16xf32>
    %122 = vector.multi_reduction <add>, %121, %cst_52 [1] : vector<16x32xf32> to vector<16xf32>
    %123 = vector.shape_cast %122 : vector<16xf32> to vector<16x1xf32>
    %cst_53 = arith.constant 3.200000e+01 : f32
    %124 = vector.broadcast %cst_53 : f32 to vector<16x1xf32>
    %125 = arith.divf %123, %124 : vector<16x1xf32>
    %126 = vector.broadcast %125 : vector<16x1xf32> to vector<16x32xf32>
    %127 = arith.subf %121, %126 : vector<16x32xf32>
    %128 = arith.mulf %127, %127 : vector<16x32xf32>
    %cst_54 = arith.constant dense<0.000000e+00> : vector<16xf32>
    %129 = vector.multi_reduction <add>, %128, %cst_54 [1] : vector<16x32xf32> to vector<16xf32>
    %130 = vector.shape_cast %129 : vector<16xf32> to vector<16x1xf32>
    %cst_55 = arith.constant 3.200000e+01 : f32
    %131 = vector.broadcast %cst_55 : f32 to vector<16x1xf32>
    %132 = arith.divf %130, %131 : vector<16x1xf32>
    %133 = vector.broadcast %125 : vector<16x1xf32> to vector<16x32xf32>
    %134 = arith.subf %121, %133 : vector<16x32xf32>
    %cst_56 = arith.constant 9.99999974E-6 : f32
    %135 = vector.broadcast %cst_56 : f32 to vector<16x1xf32>
    %136 = arith.addf %132, %135 : vector<16x1xf32>
    %137 = math.rsqrt %136 : vector<16x1xf32>
    %138 = vector.broadcast %137 : vector<16x1xf32> to vector<16x32xf32>
    %139 = arith.mulf %134, %138 : vector<16x32xf32>
    %c0_57 = arith.constant 0 : index
    %c0_58 = arith.constant 0 : index
    %c0_59 = arith.constant 0 : index
    %140 = vector.load %arg13[%c0_57, %c0_58, %c0_59] : memref<1x1x32xf32, #tpu.memory_space<vmem>>, vector<1x1x32xf32>
    %141 = vector.shape_cast %140 : vector<1x1x32xf32> to vector<1x32xf32>
    %142 = vector.broadcast %141 : vector<1x32xf32> to vector<16x32xf32>
    %143 = arith.mulf %139, %142 : vector<16x32xf32>
    %c0_60 = arith.constant 0 : index
    %c0_61 = arith.constant 0 : index
    %c0_62 = arith.constant 0 : index
    %144 = vector.load %arg14[%c0_60, %c0_61, %c0_62] : memref<1x1x32xf32, #tpu.memory_space<vmem>>, vector<1x1x32xf32>
    %145 = vector.shape_cast %144 : vector<1x1x32xf32> to vector<1x32xf32>
    %146 = vector.broadcast %145 : vector<1x32xf32> to vector<16x32xf32>
    %147 = arith.addf %143, %146 : vector<16x32xf32>
    %148 = arith.truncf %147 : vector<16x32xf32> to vector<16x32xbf16>
    %c0_63 = arith.constant 0 : index
    %c0_64 = arith.constant 0 : index
    %c0_65 = arith.constant 0 : index
    %149 = vector.load %arg15[%c0_63, %c0_64, %c0_65] : memref<1x32x64xbf16, #tpu.memory_space<vmem>>, vector<1x32x64xbf16>
    %150 = vector.shape_cast %149 : vector<1x32x64xbf16> to vector<32x64xbf16>
    %cst_66 = arith.constant dense<0.000000e+00> : vector<16x64xf32>
    %151 = tpu.matmul %148, %150, %cst_66 {dimension_numbers = #tpu.dot_dimension_numbers<[1], [0], [0], [1], [0, 0, 1, 1], [], []>} : vector<16x32xbf16>, vector<32x64xbf16>, vector<16x64xf32> -> vector<16x64xf32>
    %c0_67 = arith.constant 0 : index
    %c0_68 = arith.constant 0 : index
    %c0_69 = arith.constant 0 : index
    %152 = vector.load %arg16[%c0_67, %c0_68, %c0_69] : memref<1x1x64xf32, #tpu.memory_space<vmem>>, vector<1x1x64xf32>
    %153 = vector.shape_cast %152 : vector<1x1x64xf32> to vector<1x64xf32>
    %154 = vector.broadcast %153 : vector<1x64xf32> to vector<16x64xf32>
    %155 = arith.addf %151, %154 : vector<16x64xf32>
    %cst_70 = arith.constant 0.000000e+00 : f32
    %156 = vector.broadcast %cst_70 : f32 to vector<16x64xf32>
    %157 = arith.maximumf %155, %156 : vector<16x64xf32>
    %158 = arith.truncf %157 : vector<16x64xf32> to vector<16x64xbf16>
    %c0_71 = arith.constant 0 : index
    %c0_72 = arith.constant 0 : index
    %c0_73 = arith.constant 0 : index
    %159 = vector.load %arg17[%c0_71, %c0_72, %c0_73] : memref<1x64x32xbf16, #tpu.memory_space<vmem>>, vector<1x64x32xbf16>
    %160 = vector.shape_cast %159 : vector<1x64x32xbf16> to vector<64x32xbf16>
    %cst_74 = arith.constant dense<0.000000e+00> : vector<16x32xf32>
    %161 = tpu.matmul %158, %160, %cst_74 {dimension_numbers = #tpu.dot_dimension_numbers<[1], [0], [0], [1], [0, 0, 1, 1], [], []>} : vector<16x64xbf16>, vector<64x32xbf16>, vector<16x32xf32> -> vector<16x32xf32>
    %c0_75 = arith.constant 0 : index
    %c0_76 = arith.constant 0 : index
    %c0_77 = arith.constant 0 : index
    %162 = vector.load %arg18[%c0_75, %c0_76, %c0_77] : memref<1x1x32xf32, #tpu.memory_space<vmem>>, vector<1x1x32xf32>
    %163 = vector.shape_cast %162 : vector<1x1x32xf32> to vector<1x32xf32>
    %164 = vector.broadcast %163 : vector<1x32xf32> to vector<16x32xf32>
    %165 = arith.addf %161, %164 : vector<16x32xf32>
    %166 = arith.addf %121, %165 : vector<16x32xf32>
    %167 = vector.shape_cast %166 : vector<16x32xf32> to vector<2x8x32xf32>
    %c0_78 = arith.constant 0 : index
    %c0_79 = arith.constant 0 : index
    %c0_80 = arith.constant 0 : index
    %168 = vector.load %arg20[%c0_78, %c0_79, %c0_80] : memref<2x8x32xf32, #tpu.memory_space<vmem>>, vector<2x8x32xf32>
    tpu.vector_store %arg20[%c0_78, %c0_79, %c0_80], %167 {strides = array<i32>} : memref<2x8x32xf32, #tpu.memory_space<vmem>>, vector<2x8x32xf32>,
    %c0_81 = arith.constant 0 : index
    %c0_82 = arith.constant 0 : index
    %c0_83 = arith.constant 0 : index
    %c0_84 = arith.constant 0 : index
    %169 = vector.load %arg19[%c0_81, %c0_82, %c0_83, %c0_84] : memref<1x2x8x32xf32, #tpu.memory_space<vmem>>, vector<1x2x8x32xf32>
    %170 = vector.shape_cast %169 : vector<1x2x8x32xf32> to vector<2x8x32xf32>
    %171 = vector.shape_cast %167 : vector<2x8x32xf32> to vector<1x2x8x32xf32>
    tpu.vector_store %arg19[%c0_81, %c0_82, %c0_83, %c0_84], %171 {strides = array<i32>} : memref<1x2x8x32xf32, #tpu.memory_space<vmem>>, vector<1x2x8x32xf32>,
    return
  }
  func.func @transform_0(%arg0: i32) -> (i32, i32) {
    %c0_i32 = arith.constant 0 : i32
    %c0_i32_0 = arith.constant 0 : i32
    %c0_i32_1 = arith.constant 0 : i32
    return %c0_i32, %c0_i32_0 : i32, i32
  }
  func.func @transform_1(%arg0: i32) -> (i32, i32, i32) {
    %c0_i32 = arith.constant 0 : i32
    %c0_i32_0 = arith.constant 0 : i32
    %c0_i32_1 = arith.constant 0 : i32
    %c0_i32_2 = arith.constant 0 : i32
    return %c0_i32, %c0_i32_0, %c0_i32_1 : i32, i32, i32
  }
  func.func @transform_2(%arg0: i32) -> (i32, i32, i32) {
    %c0_i32 = arith.constant 0 : i32
    %c0_i32_0 = arith.constant 0 : i32
    %c0_i32_1 = arith.constant 0 : i32
    return %arg0, %c0_i32, %c0_i32_0 : i32, i32, i32
  }
  func.func @transform_3(%arg0: i32) -> (i32, i32, i32) {
    %c0_i32 = arith.constant 0 : i32
    %c0_i32_0 = arith.constant 0 : i32
    %c0_i32_1 = arith.constant 0 : i32
    return %arg0, %c0_i32, %c0_i32_0 : i32, i32, i32
  }
  func.func @transform_4(%arg0: i32) -> (i32, i32, i32) {
    %c0_i32 = arith.constant 0 : i32
    %c0_i32_0 = arith.constant 0 : i32
    %c0_i32_1 = arith.constant 0 : i32
    return %arg0, %c0_i32, %c0_i32_0 : i32, i32, i32
  }
  func.func @transform_5(%arg0: i32) -> (i32, i32, i32) {
    %c0_i32 = arith.constant 0 : i32
    %c0_i32_0 = arith.constant 0 : i32
    %c0_i32_1 = arith.constant 0 : i32
    return %arg0, %c0_i32, %c0_i32_0 : i32, i32, i32
  }
  func.func @transform_6(%arg0: i32) -> (i32, i32, i32) {
    %c0_i32 = arith.constant 0 : i32
    %c0_i32_0 = arith.constant 0 : i32
    %c0_i32_1 = arith.constant 0 : i32
    return %arg0, %c0_i32, %c0_i32_0 : i32, i32, i32
  }
  func.func @transform_7(%arg0: i32) -> (i32, i32, i32) {
    %c0_i32 = arith.constant 0 : i32
    %c0_i32_0 = arith.constant 0 : i32
    %c0_i32_1 = arith.constant 0 : i32
    return %arg0, %c0_i32, %c0_i32_0 : i32, i32, i32
  }
  func.func @transform_8(%arg0: i32) -> (i32, i32, i32) {
    %c0_i32 = arith.constant 0 : i32
    %c0_i32_0 = arith.constant 0 : i32
    %c0_i32_1 = arith.constant 0 : i32
    return %arg0, %c0_i32, %c0_i32_0 : i32, i32, i32
  }
  func.func @transform_9(%arg0: i32) -> (i32, i32, i32) {
    %c0_i32 = arith.constant 0 : i32
    %c0_i32_0 = arith.constant 0 : i32
    %c0_i32_1 = arith.constant 0 : i32
    return %arg0, %c0_i32, %c0_i32_0 : i32, i32, i32
  }
  func.func @transform_10(%arg0: i32) -> (i32, i32, i32) {
    %c0_i32 = arith.constant 0 : i32
    %c0_i32_0 = arith.constant 0 : i32
    %c0_i32_1 = arith.constant 0 : i32
    return %arg0, %c0_i32, %c0_i32_0 : i32, i32, i32
  }
  func.func @transform_11(%arg0: i32) -> (i32, i32, i32) {
    %c0_i32 = arith.constant 0 : i32
    %c0_i32_0 = arith.constant 0 : i32
    %c0_i32_1 = arith.constant 0 : i32
    return %arg0, %c0_i32, %c0_i32_0 : i32, i32, i32
  }
  func.func @transform_12(%arg0: i32) -> (i32, i32, i32) {
    %c0_i32 = arith.constant 0 : i32
    %c0_i32_0 = arith.constant 0 : i32
    %c0_i32_1 = arith.constant 0 : i32
    return %arg0, %c0_i32, %c0_i32_0 : i32, i32, i32
  }
  func.func @transform_13(%arg0: i32) -> (i32, i32, i32) {
    %c0_i32 = arith.constant 0 : i32
    %c0_i32_0 = arith.constant 0 : i32
    %c0_i32_1 = arith.constant 0 : i32
    return %arg0, %c0_i32, %c0_i32_0 : i32, i32, i32
  }
  func.func @transform_14(%arg0: i32) -> (i32, i32, i32) {
    %c0_i32 = arith.constant 0 : i32
    %c0_i32_0 = arith.constant 0 : i32
    %c0_i32_1 = arith.constant 0 : i32
    return %arg0, %c0_i32, %c0_i32_0 : i32, i32, i32
  }
  func.func @transform_15(%arg0: i32) -> (i32, i32, i32) {
    %c0_i32 = arith.constant 0 : i32
    %c0_i32_0 = arith.constant 0 : i32
    %c0_i32_1 = arith.constant 0 : i32
    return %arg0, %c0_i32, %c0_i32_0 : i32, i32, i32
  }
  func.func @transform_16(%arg0: i32) -> (i32, i32, i32) {
    %c0_i32 = arith.constant 0 : i32
    %c0_i32_0 = arith.constant 0 : i32
    %c0_i32_1 = arith.constant 0 : i32
    return %arg0, %c0_i32, %c0_i32_0 : i32, i32, i32
  }
  func.func @transform_17(%arg0: i32) -> (i32, i32, i32) {
    %c0_i32 = arith.constant 0 : i32
    %c0_i32_0 = arith.constant 0 : i32
    %c0_i32_1 = arith.constant 0 : i32
    return %arg0, %c0_i32, %c0_i32_0 : i32, i32, i32
  }
  func.func @transform_18(%arg0: i32) -> (i32, i32, i32, i32) {
    %c0_i32 = arith.constant 0 : i32
    %c0_i32_0 = arith.constant 0 : i32
    %c0_i32_1 = arith.constant 0 : i32
    %c0_i32_2 = arith.constant 0 : i32
    return %arg0, %c0_i32, %c0_i32_0, %c0_i32_1 : i32, i32, i32, i32
  }
}

</mosaic_0001>

<bundles_post_ra>
// kernel: tpu_custom_call.1
= control target key start
LH: loop header
LB: loop body
LE: loop exit
PB: predicated region body
PF: predicated region fallthrough
CT: control target
= control target key end

     0   :  { %s7316_s0 = inlined_call_operand.hbm [shape: f32[8,8], index: 0, kind: input, shape index: {}]   ;;  %s7317_s1 = inlined_call_operand.hbm [shape: f32[2,8,32], index: 1, kind: input, shape index: {}]   ;;  %s7318_s2 = inlined_call_operand.vmem [shape: f32[2,1,32], index: 2, kind: input, shape index: {}]   ;;  %s7319_s3 = inlined_call_operand.vmem [shape: f32[2,1,32], index: 3, kind: input, shape index: {}]   ;;  %s7320_s4 = inlined_call_operand.vmem [shape: bf16[2,32,32], index: 4, kind: input, shape index: {}]   ;;  %s7321_s5 = inlined_call_operand.vmem [shape: f32[2,1,32], index: 5, kind: input, shape index: {}]   ;;  %s7322_s6 = inlined_call_operand.vmem [shape: bf16[2,32,32], index: 6, kind: input, shape index: {}]   ;;  %s7323_s7 = inlined_call_operand.vmem [shape: f32[2,1,32], index: 7, kind: input, shape index: {}]   ;;  %s7324_s8 = inlined_call_operand.vmem [shape: bf16[2,32,32], index: 8, kind: input, shape index: {}]   ;;  %s7325_s9 = inlined_call_operand.vmem [shape: f32[2,1,32], index: 9, kind: input, shape index: {}]   ;;  %s7326_s10 = inlined_call_operand.hbm [shape: bf16[2,32,32], index: 10, kind: input, shape index: {}]   ;;  %s7327_s11 = inlined_call_operand.vmem [shape: f32[2,1,32], index: 11, kind: input, shape index: {}]   ;;  %s7328_s12 = inlined_call_operand.vmem [shape: f32[2,1,32], index: 12, kind: input, shape index: {}]   ;;  %s7329_s13 = inlined_call_operand.vmem [shape: f32[2,1,32], index: 13, kind: input, shape index: {}]   ;;  %s7330_s14 = inlined_call_operand.hbm [shape: bf16[2,32,64], index: 14, kind: input, shape index: {}]   ;;  %s7331_s15 = inlined_call_operand.vmem [shape: f32[2,1,64], index: 15, kind: input, shape index: {}]   ;;  %s7332_s16 = inlined_call_operand.vmem [shape: bf16[2,64,32], index: 16, kind: input, shape index: {}]   ;;  %s7333_s17 = inlined_call_operand.vmem [shape: f32[2,1,32], index: 17, kind: input, shape index: {}]   ;;  %s7334_s18 = inlined_call_operand.hbm [shape: f32[2,2,8,32], index: 18, kind: output, shape index: {}]  }
   0x1   :  { %7354 = sst [smem:[#allocation23_spill]] %s7316_s0 }
   0x2   :  { %7355 = sst [smem:[#allocation24_spill]] %s7317_s1 }
   0x3   :  { %7356 = sst [smem:[#allocation25_spill]] %s7318_s2 }
   0x4   :  { %7357 = sst [smem:[#allocation26_spill]] %s7320_s4 }
   0x5   :  { %7358 = sst [smem:[#allocation27_spill]] %s7322_s6 }
   0x6   :  { %7359 = sst [smem:[#allocation28_spill]] %s7324_s8 }
   0x7   :  { %7360 = sst [smem:[#allocation29_spill]] %s7326_s10 }
   0x8   :  { %7361 = sst [smem:[#allocation30_spill]] %s7327_s11 }
   0x9   :  { %7362 = sst [smem:[#allocation31_spill]] %s7328_s12 }
   0xa   :  { %7363 = sst [smem:[#allocation32_spill]] %s7329_s13 }
   0xb   :  { %7364 = sst [smem:[#allocation33_spill]] %s7330_s14 }
   0xc   :  { %7365 = sst [smem:[#allocation34_spill]] %s7331_s15 }
   0xd   :  { %7366 = sst [smem:[#allocation35_spill]] %s7332_s16 }
   0xe   :  { %7367 = sst [smem:[#allocation36_spill]] %s7333_s17 }
   0xf   :  { %7368 = sst [smem:[#allocation37_spill]] %s7334_s18 }
  0x10   :  { %23 = vsyncpa [#allocation4], 0 }
  0x11   :  { %24 = vsyncpa [#allocation7], 0 }
  0x12   :  { %25 = vsyncpa [#allocation5], 0 }
  0x13   :  { %27 = vsyncpa [#allocation5 + $0x1], 0  ;;  %s6353_s27 = smov 0   ;;  %s6355_s28 = smov 0  }
  0x14   :  { %s6357_s29 = smov 0   ;;  %s6359_s30 = smov 0  }
  0x15 LB: > { %7369 = sst [smem:[#allocation15_spill]] %s6223_s27  ;;  %s6374_s0 = sadd.s32 4294967295, %s6235_s30   ;;  %s6235_s30 = sphi %s6359_s30, %s7434_s30   ;;  %s6231_s29 = sphi %s6357_s29, %s7437_s29   ;;  %s6227_s28 = sphi %s6355_s28, %s7436_s28   ;;  %s6223_s27 = sphi %s6353_s27, %s7435_s27  }
  0x16   : > { %7370 = sst [smem:[#allocation16_spill]] %s6227_s28  ;;  %s5602_s19 = sadd.s32 4294967294, %s6235_s30  }
  0x17   : > { %7371 = sst [smem:[#allocation17_spill]] %s6231_s29  ;;  %s6378_s1 = sadd.s32 1, %s6235_s30  }
  0x18   : > { %7372 = sst [smem:[#allocation18_spill]] %s6235_s30  ;;  %s290_s20 = sadd.s32 1, %s6231_s29 }
  0x19   : > { %7373 = sst [smem:[#allocation19_spill]] %s6378_s1  ;;  %s287_s21 = ssub.s32 %s6235_s30, %s6378_s1 }
  0x1a   : > { %p297_p0 = scmp.ne.s32.totalorder %s6231_s29, %s6227_s28  ;;  %p288_p1 = scmp.eq.s32.totalorder %s287_s21, 0 }
  0x1b   : > { %p298_p2 = scmp.eq.s32.totalorder %s6235_s30, 0  ;;  %p303_p3 = scmp.ne.s32.totalorder %s6227_s28, %s6223_s27 }
  0x1c   : > { %p7335_p4 = scmp.eq.s32.totalorder %s6374_s0, 0  ;;  %p509_p7 = scmp.eq.s32.totalorder %s6374_s0, 1 }
  0x1d   : > { %s6390_s22 = scalar_select %p288_p1, %s6231_s29, %s290_s20  }
  0x1e   : > { %p6392_p5 = por %p298_p2, %p297_p0  ;;  %p6398_p6 = por %p7335_p4, %p303_p3 }
  0x1f   : > { %7374 = sst [smem:[#allocation20_spill]] %s6390_s22  ;;  %p515_p8 = scmp.eq.s32.totalorder %s5602_s19, 1 }
  0x20   : > { %s7376_s23 = scalar_select %p6398_p6, 1, 0 }
  0x21   : > { %p5603_p9 = scmp.ge.s32.totalorder %s6235_s30, 1  ;;  %p522_p10 = scmp.lt.s32.totalorder %s6235_s30, 3 }
  0x22   : > { %p6405_p11 = por %p509_p7, %p297_p0  ;;  %p6409_p12 = por %p515_p8, %p303_p3 }
  0x23   : > { %p6413_p13 = pnand %p5603_p9, %p522_p10  ;;  %s6237_s19 = smov [#allocation3]  }
  0x24   : > { %s7377_s24 = scalar_select %p6405_p11, 1, 0 }
  0x25   : > { %s7379_s25 = scalar_select %p6409_p12, 1, 0 }
  0x26   : > { %7378 = sst [smem:[#allocation21_spill]] %s7377_s24  ;;  %p5908_p4 = pneg %p6413_p13 }
  0x27   : > { %7380 = sst [smem:[#allocation22_spill]] %s7379_s25  ;;  %s535_s20 = sshll.u32 %s6237_s19, 4  ;;  %s536_s20 = int_to_ptr.vmem [resolvable:$true] %s535_s20 }
  0x28   : > { %s7381_s26 = scalar_select %p6413_p13, 1, 0 }
  0x29   : > { %p5928_p0 = scmp.lt.s32.totalorder %s6235_s30, 2  ;;  %p7382_p7 = scmp.eq.s32.totalorder %s6374_s0, 0 }
  0x2a   : > { %s613_s22 = sand.u32 1, %s6235_s30   ;;  %s615_s25 = sand.u32 1, %s6231_s29  }
  0x2b   : > { %p6424_p6 = pnand %p5908_p4, %p7382_p7  ;;  %p6431_p3 = pnand %p5928_p0, %p6392_p5 }
  0x2c   : > { %s6066_s27 = scalar_lea.vmem %s536_s20, 128  ;;  %p6074_p7 = scmp.lt.s32.totalorder %s536_s20, %s536_s20 }
  0x2d   : > { %p7346_p8 = pneg %p6424_p6  ;;  %p6067_p9 = scmp.ne.s32.totalorder %s536_s20, %s6066_s27 }
  0x2e   : > { %p6075_p2 = scmp.lt.s32.totalorder %s6066_s27, %s6066_s27 }
  0x2f   : > { %p6069_p10 = pnand %p6067_p9, %p7346_p8 }
  0x30   : > { %p6076_p1 = por %p6075_p2, %p6074_p7 }
  0x31   : > { %p6070_p4 = pneg %p6069_p10 }
  0x33   : > { %p6077_p12 = pnand %p6076_p1, %p6070_p4 }
  0x35   : > { %6080 = shalt.err (!%p6077_p12)
}
  0x36   : > { %s7385_s18 = sld [smem:[#allocation23_spill]]  ;;  %s6446_s29 = sshll.u32 %s615_s25, 4 }
  0x37   : > { %s7345_s24 = sshll.u32 %s6235_s30, 8  ;;  %s7386_s10 = sld [smem:[#allocation29_spill]] }
  0x38   : > { %s617_s15 = scalar_lea.vmem [#allocation8], %s6446_s29  ;;  %s6459_s19 = scalar_lea.sflag [#allocation4], %s613_s22 }
  0x39   : > { %s624_s2 = sshll.u32 %s617_s15, 4  ;;  %p6083_p12 = pneg %p6431_p3  ;;  %s6457_s2 = int_to_ptr.vmem [resolvable:$true] %s624_s2 }
  0x3c   : > { %5911 = dma.hbm_to_vmem [thread:$0]  (!%p6424_p6), %s7385_s18, 128, %s536_s20, [#allocation4]  }
  0x3d   : > { %s6454_s16 = scalar_lea.hbm %s7386_s10, %s7345_s24  ;;  %s6086_s20 = scalar_lea.hbm %s7386_s10, 512 }
  0x3e   : > { %s6081_s18 = scalar_lea.hbm %s6454_s16, 256  ;;  %p6087_p0 = scmp.lt.s32.totalorder %s6454_s16, %s7386_s10 }
  0x3f   : > { %p6082_p5 = scmp.ne.s32.totalorder %s6454_s16, %s6081_s18  ;;  %p6088_p9 = scmp.lt.s32.totalorder %s6086_s20, %s6081_s18 }
  0x41   : > { %p6084_p1 = pnand %p6083_p12, %p6082_p5  ;;  %p6089_p10 = por %p6088_p9, %p6087_p0 }
  0x43   : > { %p6085_p2 = pneg %p6084_p1 }
  0x45   : > { %p6090_p4 = pnand %p6089_p10, %p6085_p2 }
  0x47   : > { %6093 = shalt.err (!%p6090_p4)
}
  0x48   : > { %s6094_s15 = scalar_lea.vmem %s6457_s2, 256  ;;  %s6238_s22 = smov [#allocation8]  }
  0x49   : > { %p6095_p7 = scmp.ne.s32.totalorder %s6457_s2, %s6094_s15  ;;  %s6099_s17 = sshll.u32 %s6238_s22, 4  ;;  %s6100_s17 = int_to_ptr.vmem [resolvable:$false] %s6099_s17 }
  0x4a   : > { %s6101_s25 = scalar_lea.vmem %s6100_s17, 512  ;;  %p6102_p8 = scmp.lt.s32.totalorder %s6457_s2, %s6100_s17 }
  0x4b   : > { %p6097_p5 = pnand %p6095_p7, %p6083_p12  ;;  %p6103_p11 = scmp.lt.s32.totalorder %s6101_s25, %s6094_s15 }
  0x4d   : > { %p6098_p1 = pneg %p6097_p5  ;;  %p6104_p13 = por %p6103_p11, %p6102_p8 }
  0x4f   : > { %p6105_p0 = pnand %p6104_p13, %p6098_p1 }
  0x51   : > { %6108 = shalt.err (!%p6105_p0)
}
  0x52   : > { %s7349_s24 = smov 64   ;;  %s7350_s18 = smov 4  }
  0x53   : > { %5918 = dma.hbm_to_vmem [thread:$0]  (!%p6431_p3), %s6454_s16, 256, %s6457_s2, %s6459_s19, %s7349_s24, %s7349_s24, %s7350_s18  }
  0x54   : > { %s6241_s20 = smov [#allocation6]   ;;  %p7387_p11 = pneg %p6424_p6 }
  0x55   : > { %s545_s27 = sshll.u32 %s6241_s20, 4  ;;  %s546_s27 = int_to_ptr.vmem [resolvable:$true] %s545_s27 }
  0x56   : > { %s6120_s22 = scalar_lea.vmem %s546_s27, 256  ;;  %p6128_p9 = scmp.lt.s32.totalorder %s546_s27, %s546_s27 }
  0x57   : > { %p6121_p2 = scmp.ne.s32.totalorder %s546_s27, %s6120_s22  ;;  %p6129_p10 = scmp.lt.s32.totalorder %s6120_s22, %s6120_s22 }
  0x59   : > { %p6123_p13 = pnand %p6121_p2, %p7387_p11  ;;  %p6130_p4 = por %p6129_p10, %p6128_p9 }
  0x5b   : > { %p6124_p8 = pneg %p6123_p13 }
  0x5d   : > { %p6131_p7 = pnand %p6130_p4, %p6124_p8 }
  0x5f   : > { %6134 = shalt.err (!%p6131_p7)
}
  0x60   : > { %s6242_s15 = smov 128   ;;  %s6243_s16 = smov 8  }
  0x61   : > { %s7388_s25 = sld [smem:[#allocation24_spill]]  ;;  %s7389_s20 = sshll.u32 %s6235_s30, 8 }
  0x62   : > { %s7390_s14 = sld [smem:[#allocation33_spill]]  ;;  %s656_s22 = scalar_lea.vmem [#allocation9], %s6446_s29 }
  0x63   : > { %s663_s13 = sshll.u32 %s656_s22, 4  ;;  %s664_s13 = int_to_ptr.vmem [resolvable:$true] %s663_s13 }
  0x67   : > { %5914 = dma.hbm_to_vmem [thread:$0]  (!%p6424_p6), %s7388_s25, 256, %s546_s27, [#allocation7], %s6242_s15, %s6242_s15, %s6243_s16  }
  0x68   : > { %s6502_s10 = scalar_lea.hbm %s7390_s14, %s7389_s20  ;;  %s6140_s15 = scalar_lea.hbm %s7390_s14, 512 }
  0x69   : > { %s6135_s12 = scalar_lea.hbm %s6502_s10, 256  ;;  %p6141_p6 = scmp.lt.s32.totalorder %s6502_s10, %s7390_s14 }
  0x6a   : > { %p6136_p5 = scmp.ne.s32.totalorder %s6502_s10, %s6135_s12  ;;  %p6142_p2 = scmp.lt.s32.totalorder %s6140_s15, %s6135_s12 }
  0x6c   : > { %p6138_p1 = pnand %p6136_p5, %p6083_p12  ;;  %p6143_p11 = por %p6142_p2, %p6141_p6 }
  0x6e   : > { %p6139_p0 = pneg %p6138_p1 }
  0x70   : > { %p6144_p13 = pnand %p6143_p11, %p6139_p0 }
  0x72   : > { %6147 = shalt.err (!%p6144_p13)
}
  0x73   : > { %s6148_s29 = scalar_lea.vmem %s664_s13, 256  ;;  %s6244_s18 = smov [#allocation9]  }
  0x74   : > { %p6149_p8 = scmp.ne.s32.totalorder %s664_s13, %s6148_s29  ;;  %s6153_s2 = sshll.u32 %s6244_s18, 4  ;;  %s6154_s2 = int_to_ptr.vmem [resolvable:$false] %s6153_s2 }
  0x75   : > { %s6155_s17 = scalar_lea.vmem %s6154_s2, 512  ;;  %p6156_p4 = scmp.lt.s32.totalorder %s664_s13, %s6154_s2 }
  0x76   : > { %p6151_p9 = pnand %p6149_p8, %p6083_p12  ;;  %p6157_p7 = scmp.lt.s32.totalorder %s6155_s17, %s6148_s29 }
  0x78   : > { %p6152_p10 = pneg %p6151_p9  ;;  %p6158_p5 = por %p6157_p7, %p6156_p4 }
  0x7a   : > { %p6159_p1 = pnand %p6158_p5, %p6152_p10 }
  0x7c   : > { %6162 = shalt.err (!%p6159_p1)
}
  0x7d   : > { %s7391_s12 = smov 4   ;;  %s7392_s25 = smov 64  }
  0x7e   : > { %5921 = dma.hbm_to_vmem [thread:$0]  (!%p6431_p3), %s6502_s10, 256, %s664_s13, %s6459_s19, %s7392_s25, %s7392_s25, %s7391_s12  }
  0x7f   : > { %p7393_p12 = scmp.ne.s32.totalorder %s7381_s26, 0 }
  0x80   : > { %p7394_p0 = scmp.eq.s32.totalorder (!%p7393_p12), %s6374_s0, 0 }
  0x81   : > { %695 = sbr.rel (%p7393_p12) target bundleno = 3451 (0xd7b), region = 92 }
  0x86   : > { %6206 = dma.done.wait (%p7394_p0), [#allocation4], 128   ;;  %p7395_p6 = pmov %p7394_p0 }
  0x87   : > { %p7396_p2 = pmov %p7394_p0 }
  0x88   : > { %6208 = vsyncadd (%p7395_p6), [#allocation4], 4294967168 }
  0x89   : > { %6210 = dma.done.wait (%p7396_p2), [#allocation7], 256   ;;  %p7397_p11 = pmov %p7394_p0 }
  0x8a   : > { %s705_s10 = sand.u32 1, %s6374_s0   ;;  %s7351_s13 = sand.u32 1, %s6227_s28  }
  0x8b   : > { %6212 = vsyncadd (%p7397_p11), [#allocation7], 4294967040  ;;  %s6541_s1 = sshll.u32 %s7351_s13, 4  ;;  %s706_s26 = scalar_lea.sflag [#allocation4], %s705_s10 }
  0x8c   : > { %p7398_p3 = scmp.ne.s32.totalorder %s7376_s23, 0 }
  0x8e   : > { %6214 = dma.done.wait (%p7398_p3), %s706_s26, 512  }
  0x8f   : > { %6216 = vsyncadd (%p7398_p3), %s706_s26, 4294966784  ;;  %p826_p13 = scmp.lt.s32.totalorder %s6374_s0, 1  ;;  %s7400_s4 = sld [smem:[#allocation26_spill]] }
  0x90   : > { %s7401_s6 = sld [smem:[#allocation27_spill]]  ;;  %s718_s26 = scalar_lea.vmem [#allocation9], %s6541_s1 }
  0x91   : > { %s6550_s20 = scalar_select %p826_p13, %s6374_s0, 1 }
  0x92   : > { %s7402_s8 = sld [smem:[#allocation28_spill]]  ;;  %p7409_p8 = scmp.ne.s32.totalorder %s6374_s0, 0 }
  0x93   : > { %s5689_s29 = sshll.u32 %s6550_s20, 4  ;;  %s7405_s15 = sld [smem:[#allocation32_spill]] }
  0x94   : > { %s7406_s19 = sld [smem:[#allocation34_spill]] }
  0x95   : > { %s6568_s10 = scalar_lea.vmem %s7400_s4, %s5689_s29  ;;  %s7404_s4 = sld [smem:[#allocation31_spill]] }
  0x96   : > { %s6573_s21 = scalar_lea.vmem %s7401_s6, %s5689_s29  ;;  %s7407_s2 = sld [smem:[#allocation35_spill]] }
  0x97   : > { %s7408_s23 = sld [smem:[#allocation36_spill]] }
  0x98   : > { %s6582_s24 = scalar_lea.vmem %s7402_s8, %s5689_s29  ;;  %s5692_s8 = sshll.u32 %s6550_s20, 5 }
  0x99   : > { %s864_s16 = scalar_lea.vmem %s7405_s15, %s6550_s20  ;;  %880 = sbr.rel (%p7409_p8) target bundleno = 160 (0xa0), region = 112 }
  0x9a   : > { %s867_s29 = scalar_lea.vmem %s7406_s19, %s6550_s20 }
  0x9b   : > { %s861_s6 = scalar_lea.vmem %s7404_s4, %s6550_s20  ;;  %s6616_s4 = scalar_lea.vmem [#allocation10], %s6541_s1 }
  0x9c   : > { %s6608_s12 = scalar_lea.vmem %s7407_s2, %s5692_s8 }
  0x9d   : > { %s875_s11 = scalar_lea.vmem %s7408_s23, %s6550_s20 }
  0x9e   : > { %v881_v0 = vld [vmem:[#allocation6] sm:$0xff]  ;;  %vm883_vm0 = vcmask 261120   ;;  %v882_v1 = vld [vmem:[#allocation6 + $0x8] sm:$0xff] }
  0x9f   : > { %884 = vst.msk [vmem:[#allocation2] sm:$0xff] %vm883_vm0, %v881_v0  ;;  %885 = vst.msk [vmem:[#allocation2 + $0x8] sm:$0xff] %vm883_vm0, %v882_v1 }
  0xa0 PF: > { %vm889_vm1 = vcmask 261120   ;;  %v5999_v16 = vld [vmem:[%s6568_s10 + $0x8] sm:$0xff]   ;;  %v6245_v18 = vmov 0.0   ;;  %v6001_v19 = vld [vmem:[%s6568_s10] sm:$0xff]   ;;  %vm6246_vm2 = vmmov 0   ;;  %s7410_s28 = sld [smem:[#allocation25_spill]]  ;;  %s7414_s19 = scalar_lea.vmem %s7321_s5, %s6550_s20  ;;  %v1148_v63 = vlaneseq }
  0xa1   : > { %v6000_v17 = vld [vmem:[%s6573_s21 + $0x8] sm:$0xff]   ;;  %5746 = vmatprep.subr.bf16.mxu0 %v6245_v18  ;;  %5754 = vmatprep.subr.bf16.mxu1 %v6245_v18  ;;  %v6002_v20 = vld [vmem:[%s6573_s21] sm:$0xff]   ;;  %s7412_s21 = scalar_lea.vmem %s7319_s3, %s6550_s20  ;;  %s6247_s18 = smov 112   ;;  %v6250_v61 = vmov 1983009808   ;;  %vm1875_vm3 = vcmask 1043456  }
  0xa2   : > { %5747 = vmatpush3.bf16.msra.mxu0 %v5999_v16  ;;  %5755 = vmatpush3.bf16.msra.mxu1 %v6000_v17  ;;  %v5629_v33 = vld [vmem:[%s7412_s21] ss:$0 sm:$0xff]  ;;  %v6003_v37 = vld [vmem:[%s6582_s24 + $0x8] sm:$0xff]   ;;  %s6248_s2 = smov 120   ;;  %s6249_s17 = smov 104   ;;  %v1146_v62 = vunpack.c.l.s4 %v6250_v61  ;;  %vm1871_vm4 = vcmask 64512  }
  0xa3   : > { %5748 = vmatprep.subr.bf16.mxu0 %v6245_v18  ;;  %5756 = vmatprep.subr.bf16.mxu1 %v6245_v18  ;;  %v6004_v39 = vld [vmem:[%s6582_s24] sm:$0xff]   ;;  %s7413_s24 = scalar_lea.vmem %s7323_s7, %s6550_s20  ;;  %s7415_s14 = scalar_lea.vmem %s7325_s9, %s6550_s20  ;;  %v6251_v0 = vmov 1934713408   ;;  %vm3096_vm5 = vcmask 130048   ;;  %vm3098_vm6 = vcmask 195584   ;;  %vm5287_vm7 = vcmask 523264  }
  0xa4   : > { %5750 = vmatprep.mubr.msk.bf16.mxu0 %vm6246_vm2, %v6245_v18  ;;  %5758 = vmatprep.mubr.msk.bf16.mxu1 %vm6246_vm2, %v6245_v18  ;;  %v5634_v40 = vld [vmem:[%s7413_s24] ss:$0 sm:$0xff]  ;;  %v1178_v1 = vunpack.c.l.s4 %v6251_v0  ;;  %s6253_s23 = smov 16   ;;  %s6254_s10 = smov 8  }
  0xa5   : > { %v5630_v44 = vld [vmem:[%s7414_s19] ss:$0 sm:$0xff]  ;;  %s6255_s21 = smov 24   ;;  %s7418_s24 = sld [smem:[#allocation30_spill]] }
  0xa6   : > { %v886_v2 = vld [vmem:[#allocation2] sm:$0xff]  ;;  %v887_v3 = vld [vmem:[#allocation2 + $0x8] sm:$0xff]  ;;  %5749 = vmatpush3.bf16.msra.mxu0 %v6001_v19  ;;  %5757 = vmatpush3.bf16.msra.mxu1 %v6002_v20  ;;  %s7411_s30 = scalar_lea.vmem %s7410_s28, %s6550_s20  ;;  %s7416_s28 = scalar_lea.vmem [#allocation8], %s6541_s1 }
  0xa7   : > { %v890_v4 = vsel %vm889_vm1, %v886_v2, 0.0  ;;  %v893_v5 = vsel %vm889_vm1, %v887_v3, 0.0  ;;  %5762 = vmatprep.subr.bf16.mxu0 %v6245_v18  ;;  %5770 = vmatprep.subr.bf16.mxu1 %v6245_v18  ;;  %v5628_v29 = vld [vmem:[%s7411_s30] ss:$0 sm:$0xff]  ;;  %s7417_s30 = smov %s7416_s28 }
  0xa8   : > { %891 = vadd.xlane.f32.xlu0 %v890_v4  ;;  %v6689_v57 = vld [vmem:[%s7415_s14] ss:$0 sm:$0xff]  ;;  %s7425_s14 = sld [smem:[#allocation21_spill]] }
  0xab   : > { %s7419_s15 = scalar_lea.vmem %s7418_s24, %s6550_s20  ;;  %s6256_s24 = smov [#allocation10]  }
  0xac   : > { %894 = vadd.xlane.f32.xlu0 %v893_v5  ;;  %v1179_v5 = vunpack.c.0.s8 %v1178_v1 }
  0xae   : > { %p7428_p10 = scmp.ne.s32.totalorder %s7425_s14, 0 }
 0x131   : > { %v892_v6 = vpop.xlane.xlu0 %891 }
 0x132   : > { %v897_v7 = vmul.f32 0.03125, %v892_v6 }
 0x134   : > { %v899_v8 = vsub.f32 %v886_v2, %v897_v7  ;;  %v1147_v2 = vunpack.c.0.s8 %v1146_v62 }
 0x135   : > { %v895_v9 = vpop.xlane.xlu0 %894 }
 0x136   : > { %v898_v10 = vmul.f32 0.03125, %v895_v9  ;;  %v901_v11 = vmul.f32 %v899_v8, %v899_v8 }
 0x138   : > { %v900_v12 = vsub.f32 %v887_v3, %v898_v10  ;;  %v903_v13 = vsel %vm889_vm1, %v901_v11, 0.0  ;;  %v1149_v3 = vshrl.u32 %v1148_v63, 7 }
 0x139   : > { %904 = vadd.xlane.f32.xlu1 %v903_v13 }
 0x13a   : > { %v902_v14 = vmul.f32 %v900_v12, %v900_v12  ;;  %v6694_v6 = vsub.s32 %v1147_v2, %v1149_v3  ;;  %v6696_v13 = vsub.s32 %v1179_v5, %v1149_v3 }
 0x13c   : > { %v906_v15 = vsel %vm889_vm1, %v902_v14, 0.0 }
 0x13d   : > { %907 = vadd.xlane.f32.xlu1 %v906_v15 }
 0x1c2   : > { %v905_v21 = vpop.xlane.xlu1 %904 }
 0x1c3   : > { %v909_v22 = vmul.f32 0.03125, %v905_v21 }
 0x1c5   : > { %v911_v23 = vadd.f32 1e-05, %v909_v22 }
 0x1c6   : > { %v908_v24 = vpop.xlane.xlu1 %907 }
 0x1c7   : > { %6013 = vrsqrt.f32 %v911_v23  ;;  %v910_v25 = vmul.f32 0.03125, %v908_v24 }
 0x1c9   : > { %v912_v26 = vadd.f32 1e-05, %v910_v25 }
 0x1cb   : > { %6015 = vrsqrt.f32 %v912_v26 }
 0x1d4   : > { %v6014_v27 = vpop.eup %6013 }
 0x1d5   : > { %v915_v28 = vmul.f32 %v6014_v27, %v899_v8 }
 0x1d7   : > { %v924_v32 = vmul.f32 %v5628_v29, %v915_v28 }
 0x1d8   : > { %v6016_v30 = vpop.eup %6015 }
 0x1d9   : > { %v916_v31 = vmul.f32 %v6016_v30, %v900_v12  ;;  %v933_v35 = vadd.f32 %v5629_v33, %v924_v32 }
 0x1db   : > { %v925_v34 = vmul.f32 %v5628_v29, %v916_v31 }
 0x1dd   : > { %v934_v36 = vadd.f32 %v5629_v33, %v925_v34 }
 0x1df   : > { %v935_v38 = vpack.c.bf16 %v934_v36, %v933_v35 }
 0x1e1   : > { %5751 = vmatmul.mubr.msk.bf16.vlgmr.msra.gmra.mxu0 %vm889_vm1, %v935_v38  ;;  %5759 = vmatmul.mubr.msk.bf16.vlgmr.msra.gmra.mxu1 %vm889_vm1, %v935_v38 }
 0x1e2   : > { %5763 = vmatpush3.bf16.msra.mxu0 %v6003_v37  ;;  %5766 = vmatprep.mubr.msk.bf16.mxu0 %vm6246_vm2, %v6245_v18 }
 0x1e3   : > { %5764 = vmatprep.subr.bf16.mxu0 %v6245_v18  ;;  %5772 = vmatprep.mubr.msk.bf16.mxu1 %vm6246_vm2, %v6245_v18 }
 0x1e6   : > { %5765 = vmatpush3.bf16.msra.mxu0 %v6004_v39 }
 0x1e7   : > { %5776 = vmatprep.subr.bf16.mxu0 %v6245_v18 }
 0x1e9   : > { %5767 = vmatmul.mubr.msk.bf16.vlgmr.msra.gmra.mxu0 %vm889_vm1, %v935_v38 }
 0x1ea   : > { %5778 = vmatprep.mubr.msk.bf16.mxu0 %vm6246_vm2, %v6245_v18 }
 0x2a1   : > { %v996_v41 = vpop.f32.mrf.mxu0  ;;  %v1062_v42 = vpop.f32.mrf.mxu1 }
 0x2a2   : > { %v1063_v43 = vadd.f32 %v5634_v40, %v1062_v42  ;;  %v997_v49 = vadd.f32 %v5630_v44, %v996_v41 }
 0x2a3   : > { %v5752_v45 = vpop.f32.mrf.mxu0  ;;  %v5760_v46 = vpop.f32.mrf.mxu1 }
 0x2a4   : > { %1223 = vrot.lane.b32.xlu1 %v1063_v43, %s6247_s18  ;;  %1220 = vrot.lane.b32.xlu0 %v1063_v43, %s6248_s2  ;;  %v6680_v55 = vmul.f32 0.35355338, %v997_v49 }
 0x2a5   : > { %v999_v47 = vpop.f32.mrf.mxu0  ;;  %v1065_v48 = vpop.f32.mrf.mxu1 }
 0x2a6   : > { %v6673_v50 = vadd.f32 %v5630_v44, %v999_v47  ;;  %v6675_v51 = vadd.f32 %v5634_v40, %v1065_v48 }
 0x2a7   : > { %v5753_v52 = vpop.f32.mrf.mxu0  ;;  %v5761_v53 = vpop.f32.mrf.mxu1 }
 0x2a8   : > { %1226 = vrot.lane.b32.xlu1 %v1063_v43, %s6249_s17 }
 0x2a9   : > { %v6678_v54 = vpop.f32.mrf.mxu0 }
 0x2ab   : > { %v5768_v56 = vpop.f32.mrf.mxu0 }
 0x2ac   : > { %1134 = vrot.lane.b32.xlu1 %v6680_v55, %s6248_s2 }
 0x2ad   : > { %v1129_v58 = vpop.f32.mrf.mxu0 }
 0x2ae   : > { %v6692_v59 = vadd.f32 %v6689_v57, %v1129_v58 }
 0x2af   : > { %v5769_v60 = vpop.f32.mrf.mxu0 }
 0x316   : > { %v1224_v4 = vpop.permute.xlu1 %1223  ;;  %v1221_v9 = vpop.permute.xlu0 %1220 }
 0x317   : > { %v1229_v7 = vcombine.low %v1063_v43, %v1224_v4  ;;  %v1230_v8 = vcombine.high %v1063_v43, %v1224_v4 }
 0x319   : > { %v1237_v14 = vrot.slane %v1229_v7, %v6694_v6  ;;  %v1244_v15 = vrot.slane %v1230_v8, %v6694_v6 }
 0x31a   : > { %v1227_v10 = vpop.permute.xlu1 %1226 }
 0x31b   : > { %v1245_v11 = vcombine.low %v1221_v9, %v1227_v10  ;;  %v1246_v12 = vcombine.high %v1221_v9, %v1227_v10 }
 0x31d   : > { %v1253_v16 = vrot.slane %v1245_v11, %v6694_v6  ;;  %v1260_v17 = vrot.slane %v1246_v12, %v6694_v6  ;;  %v6252_v11 = vmov 0  }
 0x31e   : > { %v6714_v39 = vpop.permute.xlu1 %1134 }
 0x31f   : > { %v1262_v19 = vcombine.high %v1237_v14, %v1253_v16  ;;  %v1261_v20 = vcombine.low %v1237_v14, %v1253_v16  ;;  %v1277_v21 = vcombine.low %v1244_v15, %v1260_v17  ;;  %v1278_v24 = vcombine.high %v1244_v15, %v1260_v17 }
 0x321   : > { %v1276_v22 = vrot.slane %v1262_v19, %v6696_v13  ;;  %v1269_v23 = vrot.slane %v1261_v20, %v6696_v13  ;;  %v1285_v28 = vrot.slane %v1277_v21, %v6696_v13  ;;  %v1292_v32 = vrot.slane %v1278_v24, %v6696_v13 }
 0x323   : > { %v1299_v25 = vpack.c.bf16 %v1276_v22, %v1276_v22  ;;  %v1297_v26 = vpack.c.bf16 %v1269_v23, %v1269_v23  ;;  %v1293_v27 = vcombine.high %v1269_v23, %v6245_v18  ;;  %v1301_v30 = vpack.c.bf16 %v1285_v28, %v1285_v28 }
 0x324   : > { %v1294_v31 = vcombine.high %v1276_v22, %v6245_v18  ;;  %v1303_v34 = vpack.c.bf16 %v1292_v32, %v1292_v32  ;;  %v1295_v35 = vcombine.high %v1285_v28, %v6245_v18  ;;  %v1296_v37 = vcombine.high %v1292_v32, %v6245_v18 }
 0x325   : > { %1485 = vxpose.xlu0.c.b16.start.end [1/1] (short) (narrow) %v1299_v25, 16  ;;  %1453 = vxpose.xlu1.c.b16.start.end [1/1] (short) (narrow) %v1297_v26, 16  ;;  %v1298_v29 = vpack.c.bf16 %v1293_v27, %v1293_v27 }
 0x326   : > { %v1300_v33 = vpack.c.bf16 %v1294_v31, %v1294_v31  ;;  %v1302_v36 = vpack.c.bf16 %v1295_v35, %v1295_v35  ;;  %v1304_v38 = vpack.c.bf16 %v1296_v37, %v1296_v37 }
 0x329   : > { %1469 = vxpose.xlu0.c.b16.start.end [1/1] (short) (narrow) %v1298_v29, 16  ;;  %1517 = vxpose.xlu1.c.b16.start.end [1/1] (short) (narrow) %v1301_v30, 16  ;;  %v6730_v30 = vadd.f32 %v6689_v57, %v6678_v54 }
 0x32d   : > { %1501 = vxpose.xlu0.c.b16.start.end [1/1] (short) (narrow) %v1300_v33, 16  ;;  %1549 = vxpose.xlu1.c.b16.start.end [1/1] (short) (narrow) %v1303_v34, 16 }
 0x331   : > { %1533 = vxpose.xlu0.c.b16.start.end [1/1] (short) (narrow) %v1302_v36, 16  ;;  %1140 = vrot.lane.b32.xlu1 %v6680_v55, %s6249_s17 }
 0x335   : > { %1565 = vxpose.xlu0.c.b16.start.end [1/1] (short) (narrow) %v1304_v38, 16 }
 0x33e   : > { %1137 = vrot.lane.b32.xlu0 %v6680_v55, %s6247_s18 }
 0x387   : > { %v1493_v40 = vpop.trf.xlu0  ;;  %v1461_v41 = vpop.trf.xlu1 }
 0x38b   : > { %v1477_v42 = vpop.trf.xlu0  ;;  %v1525_v43 = vpop.trf.xlu1 }
 0x38c   : > { %v1581_v46 = vcombine.low %v1461_v41, %v1525_v43 }
 0x38e   : > { %v1588_v49 = vrot.slane %v1581_v46, %v6694_v6 }
 0x38f   : > { %v1509_v44 = vpop.trf.xlu0  ;;  %v1557_v45 = vpop.trf.xlu1 }
 0x390   : > { %v1589_v47 = vcombine.low %v1493_v40, %v1557_v45 }
 0x392   : > { %v1596_v52 = vrot.slane %v1589_v47, %v6694_v6 }
 0x393   : > { %v1541_v48 = vpop.trf.xlu0 }
 0x394   : > { %v1615_v53 = vcombine.low %v1477_v42, %v1541_v48  ;;  %v1597_v60 = vcombine.low %v1588_v49, %v1596_v52  ;;  %v1598_v61 = vcombine.high %v1588_v49, %v1596_v52 }
 0x396   : > { %v1622_v62 = vrot.slane %v1615_v53, %v6694_v6  ;;  %v1605_v2 = vrot.slane %v1597_v60, %v6696_v13  ;;  %v1612_v3 = vrot.slane %v1598_v61, %v6696_v13 }
 0x397   : > { %v1573_v56 = vpop.trf.xlu0 }
 0x398   : > { %v1623_v58 = vcombine.low %v1509_v44, %v1573_v56  ;;  %v1653_v14 = vshrl.u32 %v1605_v2, 16  ;;  %v1669_v15 = vshrl.u32 %v1612_v3, 16  ;;  %v1613_v16 = vcombine.high %v1605_v2, %v6252_v11 }
 0x399   : > { %v1614_v23 = vcombine.high %v1612_v3, %v6252_v11 }
 0x39a   : > { %v1630_v63 = vrot.slane %v1623_v58, %v6694_v6  ;;  %v1661_v22 = vshrl.u32 %v1613_v16, 16 }
 0x39b   : > { %v1677_v27 = vshrl.u32 %v1614_v23, 16 }
 0x39c   : > { %v1631_v0 = vcombine.low %v1622_v62, %v1630_v63  ;;  %v1632_v1 = vcombine.high %v1622_v62, %v1630_v63 }
 0x39e   : > { %v1639_v4 = vrot.slane %v1631_v0, %v6696_v13  ;;  %v1646_v5 = vrot.slane %v1632_v1, %v6696_v13 }
 0x3a0   : > { %v1667_v7 = vpack.i.b16 %v1646_v5, %v1612_v3  ;;  %v1651_v8 = vpack.i.b16 %v1639_v4, %v1605_v2  ;;  %v1654_v9 = vshrl.u32 %v1639_v4, 16  ;;  %v1670_v10 = vshrl.u32 %v1646_v5, 16 }
 0x3a1   : > { %v1647_v12 = vcombine.high %v1639_v4, %v6252_v11  ;;  %v1648_v21 = vcombine.high %v1646_v5, %v6252_v11 }
 0x3a2   : > { %1745 = vxpose.xlu0.c.b16.start.end [1/1] (short) (narrow) %v1667_v7, 16  ;;  %1681 = vxpose.xlu1.c.b16.start.end [1/1] (short) (narrow) %v1651_v8, 16  ;;  %v1655_v17 = vpack.i.b16 %v1654_v9, %v1653_v14  ;;  %v1671_v19 = vpack.i.b16 %v1670_v10, %v1669_v15 }
 0x3a3   : > { %v1662_v20 = vshrl.u32 %v1647_v12, 16  ;;  %v1659_v25 = vpack.i.b16 %v1647_v12, %v1613_v16  ;;  %v1678_v26 = vshrl.u32 %v1648_v21, 16  ;;  %v1675_v29 = vpack.i.b16 %v1648_v21, %v1614_v23  ;;  %v1141_v57 = vpop.permute.xlu1 %1140 }
 0x3a4   : > { %v1159_v33 = vcombine.low %v6714_v39, %v1141_v57  ;;  %v1160_v34 = vcombine.high %v6714_v39, %v1141_v57 }
 0x3a5   : > { %v1663_v24 = vpack.i.b16 %v1662_v20, %v1661_v22  ;;  %v1679_v28 = vpack.i.b16 %v1678_v26, %v1677_v27 }
 0x3a6   : > { %1697 = vxpose.xlu0.c.b16.start.end [1/1] (short) (narrow) %v1655_v17, 16  ;;  %1761 = vxpose.xlu1.c.b16.start.end [1/1] (short) (narrow) %v1671_v19, 16  ;;  %v1167_v37 = vrot.slane %v1159_v33, %v6694_v6  ;;  %v1174_v38 = vrot.slane %v1160_v34, %v6694_v6 }
 0x3aa   : > { %1729 = vxpose.xlu1.c.b16.start.end [1/1] (short) (narrow) %v1663_v24, 16  ;;  %1713 = vxpose.xlu0.c.b16.start.end [1/1] (short) (narrow) %v1659_v25, 16 }
 0x3ae   : > { %1793 = vxpose.xlu1.c.b16.start.end [1/1] (short) (narrow) %v1679_v28, 16  ;;  %1777 = vxpose.xlu0.c.b16.start.end [1/1] (short) (narrow) %v1675_v29, 16 }
 0x3b0   : > { %v1138_v54 = vpop.permute.xlu0 %1137 }
 0x3b1   : > { %v1143_v31 = vcombine.low %v6680_v55, %v1138_v54  ;;  %v1144_v32 = vcombine.high %v6680_v55, %v1138_v54 }
 0x3b2   : > { %1309 = vrot.lane.b32.xlu1 %v6730_v30, %s6247_s18 }
 0x3b3   : > { %v1151_v35 = vrot.slane %v1143_v31, %v6694_v6  ;;  %v1158_v36 = vrot.slane %v1144_v32, %v6694_v6 }
 0x3b5   : > { %v1175_v40 = vcombine.low %v1151_v35, %v1167_v37  ;;  %v1176_v41 = vcombine.high %v1151_v35, %v1167_v37  ;;  %v1191_v42 = vcombine.low %v1158_v36, %v1174_v38  ;;  %v1192_v43 = vcombine.high %v1158_v36, %v1174_v38 }
 0x3b6   : > { %1312 = vrot.lane.b32.xlu1 %v6730_v30, %s6249_s17 }
 0x3b7   : > { %1306 = vrot.lane.b32.xlu0 %v6730_v30, %s6248_s2  ;;  %v1183_v44 = vrot.slane %v1175_v40, %v6696_v13  ;;  %v1190_v55 = vrot.slane %v1176_v41, %v6696_v13  ;;  %v1199_v45 = vrot.slane %v1191_v42, %v6696_v13  ;;  %v1206_v39 = vrot.slane %v1192_v43, %v6696_v13 }
 0x3b9   : > { %v1207_v48 = vcombine.high %v1183_v44, %v6245_v18  ;;  %v1208_v49 = vcombine.high %v1190_v55, %v6245_v18  ;;  %v1209_v52 = vcombine.high %v1199_v45, %v6245_v18  ;;  %v1210_v53 = vcombine.high %v1206_v39, %v6245_v18 }
 0x3ba   : > { %3187 = vrot.lane.b32.xlu1 %v6675_v51, %s6248_s2  ;;  %v5642_v62 = vpack.c.bf16 %v1199_v45, %v1183_v44  ;;  %v5643_v63 = vpack.c.bf16 %v1206_v39, %v1190_v55 }
 0x3bb   : > { %3190 = vrot.lane.b32.xlu0 %v6675_v51, %s6247_s18  ;;  %v5644_v60 = vpack.c.bf16 %v1209_v52, %v1207_v48  ;;  %v5645_v61 = vpack.c.bf16 %v1210_v53, %v1208_v49 }
 0x3bc   : > { %v1398_v7 = vrot.slane %v5642_v62, %v6694_v6  ;;  %v1406_v8 = vrot.slane %v5643_v63, %v6694_v6 }
 0x3bd   : > { %v1423_v2 = vrot.slane %v5644_v60, %v6694_v6  ;;  %v1431_v3 = vrot.slane %v5645_v61, %v6694_v6 }
 0x3be   : > { %3193 = vrot.lane.b32.xlu1 %v6675_v51, %s6249_s17  ;;  %v1407_v21 = vcombine.low %v1398_v7, %v1406_v8 }
 0x3bf   : > { %v1432_v15 = vcombine.low %v1423_v2, %v1431_v3 }
 0x3c0   : > { %v1414_v27 = vrot.slane %v1407_v21, %v6696_v13 }
 0x3c1   : > { %v1439_v26 = vrot.slane %v1432_v15, %v6696_v13 }
 0x3c2   : > { %v1444_v41 = vshrl.u32 %v1414_v27, 16  ;;  %v1415_v39 = vcombine.high %v1414_v27, %v6252_v11 }
 0x3c3   : > { %v1445_v34 = vshrl.u32 %v1439_v26, 16  ;;  %v1443_v40 = vpack.i.b16 %v1439_v26, %v1414_v27  ;;  %v1440_v55 = vcombine.high %v1439_v26, %v6252_v11 }
 0x3c4   : > { %v1450_v49 = vshrl.u32 %v1415_v39, 16 }
 0x3c5   : > { %v1446_v44 = vpack.i.b16 %v1445_v34, %v1444_v41  ;;  %v1449_v48 = vpack.i.b16 %v1440_v55, %v1415_v39 }
 0x404   : > { %v1753_v46 = vpop.trf.xlu0  ;;  %v1689_v47 = vpop.trf.xlu1 }
 0x405   : > { %v1809_v4 = vcombine.low %v1689_v47, %v1753_v46  ;;  %v1451_v46 = vshrl.u32 %v1440_v55, 16 }
 0x407   : > { %v1816_v16 = vrot.slane %v1809_v4, %v6694_v6  ;;  %v1452_v52 = vpack.i.b16 %v1451_v46, %v1450_v49 }
 0x408   : > { %v1705_v56 = vpop.trf.xlu0  ;;  %v1769_v58 = vpop.trf.xlu1 }
 0x409   : > { %v1834_v5 = vcombine.low %v1705_v56, %v1769_v58 }
 0x40b   : > { %v1841_v17 = vrot.slane %v1834_v5, %v6694_v6 }
 0x40c   : > { %v1721_v0 = vpop.trf.xlu0  ;;  %v1737_v1 = vpop.trf.xlu1 }
 0x410   : > { %v1785_v9 = vpop.trf.xlu0  ;;  %v1801_v10 = vpop.trf.xlu1 }
 0x411   : > { %v1817_v12 = vcombine.low %v1721_v0, %v1785_v9  ;;  %v1842_v14 = vcombine.low %v1737_v1, %v1801_v10 }
 0x413   : > { %v1824_v19 = vrot.slane %v1817_v12, %v6694_v6  ;;  %v1849_v20 = vrot.slane %v1842_v14, %v6694_v6 }
 0x415   : > { %v1825_v22 = vcombine.low %v1816_v16, %v1824_v19  ;;  %v1850_v23 = vcombine.low %v1841_v17, %v1849_v20 }
 0x417   : > { %v1832_v24 = vrot.slane %v1825_v22, %v6696_v13  ;;  %v1857_v25 = vrot.slane %v1850_v23, %v6696_v13 }
 0x419   : > { %v1861_v28 = vpack.i.b16 %v1857_v25, %v1832_v24  ;;  %v1862_v29 = vshrl.u32 %v1832_v24, 16  ;;  %v1863_v54 = vshrl.u32 %v1857_v25, 16  ;;  %v1833_v57 = vcombine.high %v1832_v24, %v6252_v11 }
 0x41a   : > { %v1858_v31 = vcombine.high %v1857_v25, %v6252_v11 }
 0x41b   : > { %v1877_v32 = vsel %vm1875_vm3, %v1861_v28, 0  ;;  %v1864_v33 = vpack.i.b16 %v1863_v54, %v1862_v29  ;;  %v1868_v35 = vshrl.u32 %v1833_v57, 16 }
 0x41c   : > { %5771 = vmatpush3.bf16.msra.mxu1 %v1877_v32  ;;  %v1867_v36 = vpack.i.b16 %v1858_v31, %v1833_v57  ;;  %v1869_v37 = vshrl.u32 %v1858_v31, 16 }
 0x41d   : > { %v1923_v38 = vsel %vm1875_vm3, %v1864_v33, 0  ;;  %5782 = vmatprep.subr.bf16.mxu1 %v6245_v18 }
 0x41e   : > { %5777 = vmatpush3.bf16.msra.mxu0 %v1923_v38  ;;  %v1870_v42 = vpack.i.b16 %v1869_v37, %v1868_v35  ;;  %v1969_v43 = vsel %vm1875_vm3, %v1867_v36, 0 }
 0x41f   : > { %5773 = vmatmul.mubr.msk.bf16.vlgmr.msra.gmra.mxu1 %vm1871_vm4, %v1443_v40  ;;  %5788 = vmatprep.subr.bf16.mxu0 %v6245_v18 }
 0x420   : > { %5783 = vmatpush3.bf16.msra.mxu1 %v1969_v43  ;;  %5784 = vmatprep.mubr.msk.bf16.mxu1 %vm6246_vm2, %v6245_v18  ;;  %v2015_v45 = vsel %vm1875_vm3, %v1870_v42, 0 }
 0x421   : > { %5779 = vmatmul.mubr.msk.bf16.vlgmr.msra.gmra.mxu0 %vm1871_vm4, %v1446_v44  ;;  %5794 = vmatprep.subr.bf16.mxu1 %v6245_v18 }
 0x422   : > { %5789 = vmatpush3.bf16.msra.mxu0 %v2015_v45  ;;  %5790 = vmatprep.mubr.msk.bf16.mxu0 %vm6246_vm2, %v6245_v18 }
 0x423   : > { %5800 = vmatprep.subr.bf16.mxu0 %v6245_v18 }
 0x424   : > { %v1310_v47 = vpop.permute.xlu1 %1309 }
 0x425   : > { %v1315_v53 = vcombine.low %v6730_v30, %v1310_v47  ;;  %v1316_v58 = vcombine.high %v6730_v30, %v1310_v47 }
 0x427   : > { %5785 = vmatmul.mubr.msk.bf16.vlgmr.msra.gmra.mxu1 %vm1871_vm4, %v1449_v48  ;;  %v1323_v63 = vrot.slane %v1315_v53, %v6694_v6  ;;  %v1330_v3 = vrot.slane %v1316_v58, %v6694_v6  ;;  %v6825_v58 = vmul.f32 0.35355338, %v6673_v50 }
 0x428   : > { %v1313_v56 = vpop.permute.xlu1 %1312  ;;  %5796 = vmatprep.mubr.msk.bf16.mxu1 %vm6246_vm2, %v6245_v18 }
 0x429   : > { %5791 = vmatmul.mubr.msk.bf16.vlgmr.msra.gmra.mxu0 %vm1871_vm4, %v1452_v52  ;;  %v1307_v60 = vpop.permute.xlu0 %1306 }
 0x42a   : > { %v1331_v61 = vcombine.low %v1307_v60, %v1313_v56  ;;  %v1332_v62 = vcombine.high %v1307_v60, %v1313_v56  ;;  %5802 = vmatprep.mubr.msk.bf16.mxu0 %vm6246_vm2, %v6245_v18 }
 0x42c   : > { %v1339_v0 = vrot.slane %v1331_v61, %v6694_v6  ;;  %v1346_v1 = vrot.slane %v1332_v62, %v6694_v6  ;;  %v3188_v2 = vpop.permute.xlu1 %3187 }
 0x42d   : > { %v3191_v4 = vpop.permute.xlu0 %3190 }
 0x42e   : > { %v1347_v5 = vcombine.low %v1323_v63, %v1339_v0  ;;  %v1348_v30 = vcombine.high %v1323_v63, %v1339_v0  ;;  %v3196_v7 = vcombine.low %v6675_v51, %v3191_v4  ;;  %v1363_v8 = vcombine.low %v1330_v3, %v1346_v1 }
 0x42f   : > { %v1364_v12 = vcombine.high %v1330_v3, %v1346_v1  ;;  %v3197_v27 = vcombine.high %v6675_v51, %v3191_v4 }
 0x430   : > { %v3194_v9 = vpop.permute.xlu1 %3193  ;;  %v1355_v10 = vrot.slane %v1347_v5, %v6696_v13  ;;  %v1371_v15 = vrot.slane %v1363_v8, %v6696_v13  ;;  %v1362_v19 = vrot.slane %v1348_v30, %v6696_v13  ;;  %v3204_v20 = vrot.slane %v3196_v7, %v6694_v6 }
 0x431   : > { %v3212_v14 = vcombine.low %v3188_v2, %v3194_v9  ;;  %v3213_v21 = vcombine.high %v3188_v2, %v3194_v9  ;;  %v1378_v25 = vrot.slane %v1364_v12, %v6696_v13  ;;  %v3211_v34 = vrot.slane %v3197_v27, %v6694_v6 }
 0x432   : > { %v1383_v16 = vpack.c.bf16 %v1355_v10, %v1355_v10  ;;  %v1379_v17 = vcombine.high %v1355_v10, %v6245_v18  ;;  %v1381_v24 = vcombine.high %v1371_v15, %v6245_v18  ;;  %v1385_v28 = vpack.c.bf16 %v1362_v19, %v1362_v19 }
 0x433   : > { %v3220_v22 = vrot.slane %v3212_v14, %v6694_v6  ;;  %v1380_v29 = vcombine.high %v1362_v19, %v6245_v18  ;;  %v3227_v54 = vrot.slane %v3213_v21, %v6694_v6  ;;  %v1382_v31 = vcombine.high %v1378_v25, %v6245_v18 }
 0x434   : > { %2097 = vxpose.xlu0.c.b16.start.end [1/1] (short) (narrow) %v1383_v16, 16  ;;  %v1384_v23 = vpack.c.bf16 %v1379_v17, %v1379_v17  ;;  %v1388_v57 = vpack.c.bf16 %v1381_v24, %v1381_v24  ;;  %v1387_v40 = vpack.c.bf16 %v1371_v15, %v1371_v15  ;;  %v1389_v55 = vpack.c.bf16 %v1378_v25, %v1378_v25 }
 0x435   : > { %v3228_v26 = vcombine.low %v3204_v20, %v3220_v22  ;;  %v3229_v33 = vcombine.high %v3204_v20, %v3220_v22  ;;  %v1386_v35 = vpack.c.bf16 %v1380_v29, %v1380_v29  ;;  %v1390_v36 = vpack.c.bf16 %v1382_v31, %v1382_v31 }
 0x436   : > { %2113 = vxpose.xlu1.c.b16.start.end [1/1] (short) (narrow) %v1384_v23, 16  ;;  %v3244_v38 = vcombine.low %v3211_v34, %v3227_v54  ;;  %v3245_v44 = vcombine.high %v3211_v34, %v3227_v54 }
 0x437   : > { %v3236_v32 = vrot.slane %v3228_v26, %v6696_v13  ;;  %v3243_v37 = vrot.slane %v3229_v33, %v6696_v13 }
 0x438   : > { %2129 = vxpose.xlu0.c.b16.start.end [1/1] (short) (narrow) %v1385_v28, 16  ;;  %v3252_v43 = vrot.slane %v3244_v38, %v6696_v13  ;;  %v3259_v46 = vrot.slane %v3245_v44, %v6696_v13 }
 0x439   : > { %v3260_v51 = vcombine.high %v3236_v32, %v6245_v18  ;;  %v3261_v42 = vcombine.high %v3243_v37, %v6245_v18  ;;  %v3264_v47 = vpack.c.bf16 %v3236_v32, %v3236_v32  ;;  %v3266_v52 = vpack.c.bf16 %v3243_v37, %v3243_v37 }
 0x43a   : > { %2177 = vxpose.xlu1.c.b16.start.end [1/1] (short) (narrow) %v1388_v57, 16  ;;  %v3262_v39 = vcombine.high %v3252_v43, %v6245_v18  ;;  %v3263_v49 = vcombine.high %v3259_v46, %v6245_v18  ;;  %v3268_v56 = vpack.c.bf16 %v3252_v43, %v3252_v43  ;;  %v3270_v60 = vpack.c.bf16 %v3259_v46, %v3259_v46 }
 0x43b   : > { %v3265_v41 = vpack.c.bf16 %v3260_v51, %v3260_v51  ;;  %v3267_v45 = vpack.c.bf16 %v3261_v42, %v3261_v42  ;;  %v6841_v42 = vld [vmem:[#allocation3] sm:$0xff] }
 0x43c   : > { %2145 = vxpose.xlu0.c.b16.start.end [1/1] (short) (narrow) %v1386_v35, 16  ;;  %v3269_v48 = vpack.c.bf16 %v3262_v39, %v3262_v39  ;;  %v3271_v53 = vpack.c.bf16 %v3263_v49, %v3263_v49 }
 0x43e   : > { %2209 = vxpose.xlu1.c.b16.start.end [1/1] (short) (narrow) %v1390_v36, 16 }
 0x440   : > { %2161 = vxpose.xlu0.c.b16.start.end [1/1] (short) (narrow) %v1387_v40, 16 }
 0x442   : > { %3436 = vxpose.xlu1.c.b16.start.end [1/1] (short) (narrow) %v3265_v41, 16 }
 0x444   : > { %2193 = vxpose.xlu0.c.b16.start.end [1/1] (short) (narrow) %v1389_v55, 16 }
 0x446   : > { %3468 = vxpose.xlu1.c.b16.start.end [1/1] (short) (narrow) %v3267_v45, 16 }
 0x448   : > { %3420 = vxpose.xlu0.c.b16.start.end [1/1] (short) (narrow) %v3264_v47, 16 }
 0x44a   : > { %3500 = vxpose.xlu1.c.b16.start.end [1/1] (short) (narrow) %v3269_v48, 16 }
 0x44c   : > { %3452 = vxpose.xlu0.c.b16.start.end [1/1] (short) (narrow) %v3266_v52, 16 }
 0x44e   : > { %3532 = vxpose.xlu1.c.b16.start.end [1/1] (short) (narrow) %v3271_v53, 16 }
 0x450   : > { %3484 = vxpose.xlu0.c.b16.start.end [1/1] (short) (narrow) %v3268_v56, 16 }
 0x452   : > { %3104 = vrot.lane.b32.xlu1 %v6825_v58, %s6247_s18 }
 0x454   : > { %3516 = vxpose.xlu0.c.b16.start.end [1/1] (short) (narrow) %v3270_v60, 16 }
 0x496   : > { %v2105_v61 = vpop.trf.xlu0 }
 0x498   : > { %v2121_v62 = vpop.trf.xlu1 }
 0x49a   : > { %v2137_v63 = vpop.trf.xlu0 }
 0x49c   : > { %v2185_v0 = vpop.trf.xlu1 }
 0x49d   : > { %v2259_v1 = vcombine.low %v2121_v62, %v2185_v0 }
 0x49e   : > { %v2153_v2 = vpop.trf.xlu0 }
 0x49f   : > { %v2266_v4 = vrot.slane %v2259_v1, %v6694_v6 }
 0x4a0   : > { %v2217_v3 = vpop.trf.xlu1 }
 0x4a1   : > { %v2267_v5 = vcombine.low %v2153_v2, %v2217_v3 }
 0x4a2   : > { %v2169_v30 = vpop.trf.xlu0 }
 0x4a3   : > { %v2225_v7 = vcombine.low %v2105_v61, %v2169_v30  ;;  %v2274_v50 = vrot.slane %v2267_v5, %v6694_v6 }
 0x4a5   : > { %v2275_v8 = vcombine.low %v2266_v4, %v2274_v50  ;;  %v2232_v10 = vrot.slane %v2225_v7, %v6694_v6  ;;  %v2276_v14 = vcombine.high %v2266_v4, %v2274_v50 }
 0x4a6   : > { %v2201_v9 = vpop.trf.xlu0 }
 0x4a7   : > { %v2233_v12 = vcombine.low %v2137_v63, %v2201_v9  ;;  %v2283_v15 = vrot.slane %v2275_v8, %v6696_v13  ;;  %v2290_v23 = vrot.slane %v2276_v14, %v6696_v13  ;;  %v3444_v8 = vpop.trf.xlu1 }
 0x4a9   : > { %v2240_v16 = vrot.slane %v2233_v12, %v6694_v6  ;;  %v2298_v21 = vshrl.u32 %v2283_v15, 16  ;;  %v2291_v27 = vcombine.high %v2283_v15, %v6252_v11  ;;  %v2292_v31 = vcombine.high %v2290_v23, %v6252_v11 }
 0x4aa   : > { %v2314_v33 = vshrl.u32 %v2290_v23, 16  ;;  %v3428_v50 = vpop.trf.xlu0 }
 0x4ab   : > { %v2241_v17 = vcombine.low %v2232_v10, %v2240_v16  ;;  %v2242_v19 = vcombine.high %v2232_v10, %v2240_v16  ;;  %v2306_v51 = vshrl.u32 %v2291_v27, 16  ;;  %v2322_v40 = vshrl.u32 %v2292_v31, 16  ;;  %v3476_v10 = vpop.trf.xlu1 }
 0x4ad   : > { %v2249_v20 = vrot.slane %v2241_v17, %v6696_v13  ;;  %v2256_v22 = vrot.slane %v2242_v19, %v6696_v13 }
 0x4ae   : > { %v3460_v9 = vpop.trf.xlu0 }
 0x4af   : > { %v2295_v24 = vpack.i.b16 %v2283_v15, %v2249_v20  ;;  %v2297_v25 = vshrl.u32 %v2249_v20, 16  ;;  %v2257_v26 = vcombine.high %v2249_v20, %v6252_v11  ;;  %v2311_v29 = vpack.i.b16 %v2290_v23, %v2256_v22  ;;  %v3508_v14 = vpop.trf.xlu1 }
 0x4b0   : > { %v2258_v57 = vcombine.high %v2256_v22, %v6252_v11  ;;  %v2313_v32 = vshrl.u32 %v2256_v22, 16  ;;  %v3582_v17 = vcombine.low %v3444_v8, %v3508_v14 }
 0x4b1   : > { %2325 = vxpose.xlu1.c.b16.start.end [1/1] (short) (narrow) %v2295_v24, 16  ;;  %v2299_v28 = vpack.i.b16 %v2298_v21, %v2297_v25  ;;  %v2303_v54 = vpack.i.b16 %v2291_v27, %v2257_v26  ;;  %v2305_v36 = vshrl.u32 %v2257_v26, 16 }
 0x4b2   : > { %v2319_v34 = vpack.i.b16 %v2292_v31, %v2258_v57  ;;  %v2315_v35 = vpack.i.b16 %v2314_v33, %v2313_v32  ;;  %v2321_v38 = vshrl.u32 %v2258_v57, 16  ;;  %v3492_v12 = vpop.trf.xlu0  ;;  %v3589_v22 = vrot.slane %v3582_v17, %v6694_v6 }
 0x4b3   : > { %2341 = vxpose.xlu0.c.b16.start.end [1/1] (short) (narrow) %v2299_v28, 16  ;;  %v2307_v37 = vpack.i.b16 %v2306_v51, %v2305_v36  ;;  %v3540_v16 = vpop.trf.xlu1  ;;  %v3548_v20 = vcombine.low %v3428_v50, %v3492_v12 }
 0x4b4   : > { %v2323_v41 = vpack.i.b16 %v2322_v40, %v2321_v38  ;;  %v3590_v19 = vcombine.low %v3476_v10, %v3540_v16 }
 0x4b5   : > { %2389 = vxpose.xlu1.c.b16.start.end [1/1] (short) (narrow) %v2311_v29, 16  ;;  %v3555_v24 = vrot.slane %v3548_v20, %v6694_v6 }
 0x4b6   : > { %v3524_v15 = vpop.trf.xlu0  ;;  %v3597_v23 = vrot.slane %v3590_v19, %v6694_v6 }
 0x4b7   : > { %2357 = vxpose.xlu0.c.b16.start.end [1/1] (short) (narrow) %v2303_v54, 16  ;;  %v3556_v21 = vcombine.low %v3460_v9, %v3524_v15 }
 0x4b8   : > { %v3598_v26 = vcombine.low %v3589_v22, %v3597_v23  ;;  %v3599_v54 = vcombine.high %v3589_v22, %v3597_v23 }
 0x4b9   : > { %2421 = vxpose.xlu1.c.b16.start.end [1/1] (short) (narrow) %v2319_v34, 16  ;;  %v3563_v25 = vrot.slane %v3556_v21, %v6694_v6 }
 0x4ba   : > { %v3606_v28 = vrot.slane %v3598_v26, %v6696_v13 }
 0x4bb   : > { %2405 = vxpose.xlu0.c.b16.start.end [1/1] (short) (narrow) %v2315_v35, 16  ;;  %v3564_v27 = vcombine.low %v3555_v24, %v3563_v25  ;;  %v3565_v31 = vcombine.high %v3555_v24, %v3563_v25  ;;  %v3613_v35 = vrot.slane %v3599_v54, %v6696_v13 }
 0x4bc   : > { %v3621_v57 = vshrl.u32 %v3606_v28, 16  ;;  %v3614_v34 = vcombine.high %v3606_v28, %v6252_v11 }
 0x4bd   : > { %v3572_v29 = vrot.slane %v3564_v27, %v6696_v13  ;;  %v3579_v36 = vrot.slane %v3565_v31, %v6696_v13 }
 0x4be   : > { %v3629_v38 = vshrl.u32 %v3614_v34, 16 }
 0x4bf   : > { %2373 = vxpose.xlu0.c.b16.start.end [1/1] (short) (narrow) %v2307_v37, 16  ;;  %v3620_v32 = vshrl.u32 %v3572_v29, 16  ;;  %v3580_v33 = vcombine.high %v3572_v29, %v6252_v11  ;;  %v3618_v40 = vpack.i.b16 %v3606_v28, %v3572_v29 }
 0x4c1   : > { %v3622_v51 = vpack.i.b16 %v3621_v57, %v3620_v32  ;;  %v3628_v37 = vshrl.u32 %v3580_v33, 16 }
 0x4c3   : > { %2437 = vxpose.xlu0.c.b16.start.end [1/1] (short) (narrow) %v2323_v41, 16  ;;  %v3637_v41 = vshrl.u32 %v3613_v35, 16 }
 0x4df   : > { %v1913_v43 = vpop.f32.mrf.mxu1 }
 0x4e0   : > { %v6844_v44 = vadd.f32 %v1913_v43, %v6841_v42  ;;  %v3630_v43 = vpack.i.b16 %v3629_v38, %v3628_v37 }
 0x4e1   : > { %v5774_v55 = vpop.f32.mrf.mxu1  ;;  %v1959_v45 = vpop.f32.mrf.mxu0 }
 0x4e2   : > { %v6847_v39 = vadd.f32 %v1959_v45, %v6841_v42  ;;  %v2057_v46 = vsel %vm1871_vm4, %v6844_v44, -inf  ;;  %v3636_v55 = vshrl.u32 %v3579_v36, 16  ;;  %v3581_v45 = vcombine.high %v3579_v36, %v6252_v11 }
 0x4e3   : > { %v1916_v47 = vpop.f32.mrf.mxu1  ;;  %2058 = vmax.xlane.f32.xlu0 %v2057_v46  ;;  %v5780_v48 = vpop.f32.mrf.mxu0  ;;  %v3615_v46 = vcombine.high %v3613_v35, %v6252_v11 }
 0x4e4   : > { %v2060_v49 = vsel %vm1871_vm4, %v6847_v39, -inf  ;;  %v3626_v47 = vpack.i.b16 %v3614_v34, %v3580_v33  ;;  %v3638_v48 = vpack.i.b16 %v3637_v41, %v3636_v55 }
 0x4e5   : > { %v5775_v52 = vpop.f32.mrf.mxu1  ;;  %2061 = vmax.xlane.f32.xlu1 %v2060_v49  ;;  %v1962_v53 = vpop.f32.mrf.mxu0  ;;  %v3644_v49 = vshrl.u32 %v3581_v45, 16 }
 0x4e6   : > { %v3645_v52 = vshrl.u32 %v3615_v46, 16  ;;  %v3634_v53 = vpack.i.b16 %v3613_v35, %v3579_v36 }
 0x4e7   : > { %v5781_v56 = vpop.f32.mrf.mxu0  ;;  %v2005_v60 = vpop.f32.mrf.mxu1 }
 0x4e8   : > { %v6858_v4 = vadd.f32 %v2005_v60, %v6841_v42  ;;  %v3646_v60 = vpack.i.b16 %v3645_v52, %v3644_v49 }
 0x4e9   : > { %v5786_v61 = vpop.f32.mrf.mxu1  ;;  %v2051_v62 = vpop.f32.mrf.mxu0 }
 0x4ea   : > { %v6861_v5 = vadd.f32 %v2051_v62, %v6841_v42  ;;  %v2063_v30 = vsel %vm1871_vm4, %v6858_v4, -inf  ;;  %v3642_v61 = vpack.i.b16 %v3615_v46, %v3581_v45 }
 0x4eb   : > { %v2008_v63 = vpop.f32.mrf.mxu1  ;;  %v5792_v0 = vpop.f32.mrf.mxu0 }
 0x4ec   : > { %v2066_v7 = vsel %vm1871_vm4, %v6861_v5, -inf  ;;  %v3105_v63 = vpop.permute.xlu1 %3104 }
 0x4ed   : > { %v5787_v1 = vpop.f32.mrf.mxu1  ;;  %v2054_v2 = vpop.f32.mrf.mxu0  ;;  %v3110_v38 = vcombine.low %v6825_v58, %v3105_v63 }
 0x4ef   : > { %v5793_v3 = vpop.f32.mrf.mxu0  ;;  %v3118_v46 = vrot.slane %v3110_v38, %v6694_v6 }
 0x4f6   : > { %3107 = vrot.lane.b32.xlu1 %v6825_v58, %s6249_s17 }
 0x4f9   : > { %3101 = vrot.lane.b32.xlu0 %v6825_v58, %s6248_s2 }
 0x513   : > { %v2333_v1 = vpop.trf.xlu1 }
 0x515   : > { %v2349_v56 = vpop.trf.xlu0 }
 0x517   : > { %v2397_v3 = vpop.trf.xlu1 }
 0x518   : > { %2064 = vmax.xlane.f32.xlu0 %v2063_v30  ;;  %v2453_v15 = vcombine.low %v2333_v1, %v2397_v3 }
 0x519   : > { %v2365_v62 = vpop.trf.xlu0 }
 0x51a   : > { %2067 = vmax.xlane.f32.xlu1 %v2066_v7  ;;  %v2460_v21 = vrot.slane %v2453_v15, %v6694_v6 }
 0x51b   : > { %v2429_v7 = vpop.trf.xlu1 }
 0x51c   : > { %v2461_v19 = vcombine.low %v2365_v62, %v2429_v7 }
 0x51d   : > { %v2413_v0 = vpop.trf.xlu0 }
 0x51e   : > { %v2478_v16 = vcombine.low %v2349_v56, %v2413_v0  ;;  %v2468_v23 = vrot.slane %v2461_v19, %v6694_v6 }
 0x520   : > { %v2485_v20 = vrot.slane %v2478_v16, %v6694_v6  ;;  %v2469_v24 = vcombine.low %v2460_v21, %v2468_v23 }
 0x521   : > { %v2381_v2 = vpop.trf.xlu0 }
 0x522   : > { %v2476_v26 = vrot.slane %v2469_v24, %v6696_v13 }
 0x524   : > { %v2506_v31 = vshrl.u32 %v2476_v26, 16  ;;  %v2477_v21 = vcombine.high %v2476_v26, %v6252_v11 }
 0x525   : > { %v2445_v30 = vpop.trf.xlu0 }
 0x526   : > { %v2486_v17 = vcombine.low %v2381_v2, %v2445_v30 }
 0x528   : > { %v2493_v22 = vrot.slane %v2486_v17, %v6694_v6 }
 0x545   : > { %3664 = vxpose.xlu0.c.b16.start.end [1/1] (short) (narrow) %v3622_v51, 16 }
 0x547   : > { %3648 = vxpose.xlu1.c.b16.start.end [1/1] (short) (narrow) %v3618_v40, 16  ;;  %v3111_v40 = vcombine.high %v6825_v58, %v3105_v63 }
 0x549   : > { %3696 = vxpose.xlu0.c.b16.start.end [1/1] (short) (narrow) %v3630_v43, 16 }
 0x54b   : > { %3680 = vxpose.xlu1.c.b16.start.end [1/1] (short) (narrow) %v3626_v47, 16  ;;  %v3125_v47 = vrot.slane %v3111_v40, %v6694_v6 }
 0x54d   : > { %3728 = vxpose.xlu0.c.b16.start.end [1/1] (short) (narrow) %v3638_v48, 16 }
 0x54f   : > { %3712 = vxpose.xlu1.c.b16.start.end [1/1] (short) (narrow) %v3634_v53, 16 }
 0x551   : > { %3760 = vxpose.xlu0.c.b16.start.end [1/1] (short) (narrow) %v3646_v60, 16 }
 0x553   : > { %3744 = vxpose.xlu1.c.b16.start.end [1/1] (short) (narrow) %v3642_v61, 16 }
 0x557   : > { %3273 = vrot.lane.b32.xlu1 %v6692_v59, %s6248_s2 }
 0x55a   : > { %3276 = vrot.lane.b32.xlu0 %v6692_v59, %s6247_s18 }
 0x55b   : > { %3279 = vrot.lane.b32.xlu1 %v6692_v59, %s6249_s17 }
 0x56c   : > { %v2059_v50 = vpop.xlane.xlu0 %2058 }
 0x56d   : > { %v2069_v8 = vsub.f32 %v6844_v44, %v2059_v50  ;;  %v2494_v44 = vcombine.low %v2485_v20, %v2493_v22 }
 0x56e   : > { %v2062_v9 = vpop.xlane.xlu1 %2061 }
 0x56f   : > { %v2073_v10 = vmul.f32 1.442695, %v2069_v8  ;;  %v2070_v12 = vsub.f32 %v6847_v39, %v2062_v9  ;;  %v6894_v39 = vrot.slane %v2494_v44, %v6696_v13 }
 0x570   : > { %v3102_v36 = vpop.permute.xlu0 %3101 }
 0x571   : > { %6017 = vpow2.f32 %v2073_v10  ;;  %v2075_v14 = vmul.f32 1.442695, %v2070_v12  ;;  %v2507_v57 = vshrl.u32 %v6894_v39, 16  ;;  %v2505_v33 = vpack.i.b16 %v6894_v39, %v2476_v26 }
 0x572   : > { %v3108_v35 = vpop.permute.xlu1 %3107 }
 0x573   : > { %6019 = vpow2.f32 %v2075_v14  ;;  %v2508_v34 = vpack.i.b16 %v2507_v57, %v2506_v31  ;;  %v3126_v51 = vcombine.low %v3102_v36, %v3108_v35  ;;  %v3127_v37 = vcombine.high %v3102_v36, %v3108_v35 }
 0x575   : > { %v3134_v41 = vrot.slane %v3126_v51, %v6694_v6  ;;  %v3141_v43 = vrot.slane %v3127_v37, %v6694_v6 }
 0x577   : > { %v3142_v53 = vcombine.low %v3118_v46, %v3134_v41  ;;  %v3143_v56 = vcombine.high %v3118_v46, %v3134_v41  ;;  %v3158_v60 = vcombine.low %v3125_v47, %v3141_v43  ;;  %v3159_v61 = vcombine.high %v3125_v47, %v3141_v43 }
 0x578   : > { %v2512_v41 = vshrl.u32 %v2477_v21, 16 }
 0x579   : > { %v3150_v63 = vrot.slane %v3142_v53, %v6696_v13  ;;  %v3166_v0 = vrot.slane %v3158_v60, %v6696_v13  ;;  %v3173_v1 = vrot.slane %v3159_v61, %v6696_v13 }
 0x57b   : > { %v3176_v7 = vcombine.high %v3166_v0, %v6245_v18  ;;  %v3177_v50 = vcombine.high %v3173_v1, %v6245_v18  ;;  %v5654_v17 = vpack.c.bf16 %v3166_v0, %v3150_v63 }
 0x57d   : > { %v3365_v35 = vrot.slane %v5654_v17, %v6694_v6 }
 0x57e   : > { %v6891_v25 = vpop.eup %6017 }
 0x57f   : > { %v2093_v27 = vpack.c.bf16 %v6891_v25, %v6891_v25 }
 0x580   : > { %v6899_v28 = vpop.eup %6019 }
 0x581   : > { %v2519_v29 = vsel %vm1871_vm4, %v2093_v27, 0  ;;  %v2094_v54 = vpack.c.bf16 %v6899_v28, %v6899_v28  ;;  %v2502_v27 = vcombine.high %v6894_v39, %v6252_v11 }
 0x582   : > { %5795 = vmatpush3.bf16.xpose.msra.mxu1 %v2519_v29 }
 0x583   : > { %v2565_v32 = vsel %vm1871_vm4, %v2094_v54, 0  ;;  %5806 = vmatprep.subr.bf16.mxu1 %v6245_v18  ;;  %v2513_v40 = vshrl.u32 %v2502_v27, 16 }
 0x584   : > { %5801 = vmatpush3.bf16.xpose.msra.mxu0 %v2565_v32 }
 0x585   : > { %5812 = vmatprep.subr.bf16.mxu0 %v6245_v18 }
 0x589   : > { %5797 = vmatmul.mubr.msk.bf16.vlgmr.msra.gmra.mxu1 %vm1871_vm4, %v2505_v33 }
 0x58a   : > { %5808 = vmatprep.mubr.msk.bf16.mxu1 %vm6246_vm2, %v6245_v18 }
 0x58b   : > { %5803 = vmatmul.mubr.msk.bf16.vlgmr.msra.gmra.mxu0 %vm1871_vm4, %v2508_v34 }
 0x58c   : > { %5814 = vmatprep.mubr.msk.bf16.mxu0 %vm6246_vm2, %v6245_v18 }
 0x5a1   : > { %v2065_v55 = vpop.xlane.xlu0 %2064 }
 0x5a2   : > { %v2071_v45 = vsub.f32 %v6858_v4, %v2065_v55  ;;  %v3157_v4 = vrot.slane %v3143_v56, %v6696_v13 }
 0x5a3   : > { %v2068_v48 = vpop.xlane.xlu1 %2067 }
 0x5a4   : > { %v2077_v49 = vmul.f32 1.442695, %v2071_v45  ;;  %v2072_v52 = vsub.f32 %v6861_v5, %v2068_v48  ;;  %v3174_v5 = vcombine.high %v3150_v63, %v6245_v18  ;;  %v3175_v30 = vcombine.high %v3157_v4, %v6245_v18 }
 0x5a5   : > { %v5655_v19 = vpack.c.bf16 %v3173_v1, %v3157_v4  ;;  %v2511_v48 = vpack.i.b16 %v2502_v27, %v2477_v21 }
 0x5a6   : > { %6021 = vpow2.f32 %v2077_v49  ;;  %v2079_v58 = vmul.f32 1.442695, %v2072_v52  ;;  %v5656_v10 = vpack.c.bf16 %v3176_v7, %v3174_v5  ;;  %v5657_v12 = vpack.c.bf16 %v3177_v50, %v3175_v30 }
 0x5a7   : > { %v3672_v62 = vpop.trf.xlu0  ;;  %v3373_v36 = vrot.slane %v5655_v19, %v6694_v6  ;;  %v2514_v49 = vpack.i.b16 %v2513_v40, %v2512_v41 }
 0x5a8   : > { %6023 = vpow2.f32 %v2079_v58  ;;  %v3390_v29 = vrot.slane %v5656_v10, %v6694_v6  ;;  %v3398_v54 = vrot.slane %v5657_v12, %v6694_v6 }
 0x5a9   : > { %v3656_v2 = vpop.trf.xlu1  ;;  %v3374_v46 = vcombine.low %v3365_v35, %v3373_v36 }
 0x5aa   : > { %v3399_v43 = vcombine.low %v3390_v29, %v3398_v54 }
 0x5ab   : > { %v3704_v3 = vpop.trf.xlu0 }
 0x5ac   : > { %v3406_v53 = vrot.slane %v3399_v43, %v6696_v13 }
 0x5ad   : > { %v3688_v8 = vpop.trf.xlu1 }
 0x5ae   : > { %v3407_v10 = vcombine.high %v3406_v53, %v6252_v11 }
 0x5af   : > { %v3736_v9 = vpop.trf.xlu0 }
 0x5b0   : > { %v3801_v14 = vcombine.low %v3672_v62, %v3736_v9  ;;  %v3381_v62 = vrot.slane %v3374_v46, %v6696_v13  ;;  %v3418_v17 = vshrl.u32 %v3407_v10, 16 }
 0x5b1   : > { %v3720_v15 = vpop.trf.xlu1 }
 0x5b2   : > { %v3776_v22 = vcombine.low %v3656_v2, %v3720_v15  ;;  %v3808_v57 = vrot.slane %v3801_v14, %v6694_v6  ;;  %v3410_v30 = vpack.i.b16 %v3406_v53, %v3381_v62  ;;  %v3411_v7 = vshrl.u32 %v3381_v62, 16 }
 0x5b3   : > { %v6931_v16 = vpop.eup %6021  ;;  %v3768_v20 = vpop.trf.xlu0  ;;  %v3382_v14 = vcombine.high %v3381_v62, %v6252_v11 }
 0x5b4   : > { %v3809_v23 = vcombine.low %v3704_v3, %v3768_v20  ;;  %v2095_v44 = vpack.c.bf16 %v6931_v16, %v6931_v16  ;;  %v3783_v39 = vrot.slane %v3776_v22, %v6694_v6  ;;  %v3412_v3 = vshrl.u32 %v3406_v53, 16 }
 0x5b5   : > { %v6936_v24 = vpop.eup %6023  ;;  %v3752_v31 = vpop.trf.xlu1  ;;  %v3416_v20 = vpack.i.b16 %v3407_v10, %v3382_v14  ;;  %v3417_v21 = vshrl.u32 %v3382_v14, 16 }
 0x5b6   : > { %v3816_v32 = vrot.slane %v3809_v23, %v6694_v6  ;;  %v3784_v26 = vcombine.low %v3688_v8, %v3752_v31  ;;  %v2611_v33 = vsel %vm1871_vm4, %v2095_v44, 0  ;;  %v2096_v34 = vpack.c.bf16 %v6936_v24, %v6936_v24 }
 0x5b7   : > { %5807 = vmatpush3.bf16.xpose.msra.mxu1 %v2611_v33  ;;  %v3413_v9 = vpack.i.b16 %v3412_v3, %v3411_v7  ;;  %v3419_v54 = vpack.i.b16 %v3418_v17, %v3417_v21 }
 0x5b8   : > { %v3817_v51 = vcombine.low %v3808_v57, %v3816_v32  ;;  %v3791_v37 = vrot.slane %v3784_v26, %v6694_v6  ;;  %v2657_v38 = vsel %vm1871_vm4, %v2096_v34, 0  ;;  %5818 = vmatprep.subr.bf16.mxu1 %v6245_v18 }
 0x5b9   : > { %5813 = vmatpush3.bf16.xpose.msra.mxu0 %v2657_v38 }
 0x5ba   : > { %v3824_v55 = vrot.slane %v3817_v51, %v6696_v13  ;;  %v3792_v45 = vcombine.low %v3783_v39, %v3791_v37  ;;  %5824 = vmatprep.subr.bf16.mxu0 %v6245_v18 }
 0x5bc   : > { %v3799_v47 = vrot.slane %v3792_v45, %v6696_v13  ;;  %v3830_v52 = vshrl.u32 %v3824_v55, 16  ;;  %v3825_v58 = vcombine.high %v3824_v55, %v6252_v11 }
 0x5be   : > { %5809 = vmatmul.mubr.msk.bf16.vlgmr.msra.gmra.mxu1 %vm1871_vm4, %v2511_v48  ;;  %v3828_v56 = vpack.i.b16 %v3824_v55, %v3799_v47  ;;  %v3829_v60 = vshrl.u32 %v3799_v47, 16  ;;  %v3800_v61 = vcombine.high %v3799_v47, %v6252_v11  ;;  %v3836_v5 = vshrl.u32 %v3825_v58, 16 }
 0x5bf   : > { %5820 = vmatprep.mubr.msk.bf16.mxu1 %vm6246_vm2, %v6245_v18 }
 0x5c0   : > { %5815 = vmatmul.mubr.msk.bf16.vlgmr.msra.gmra.mxu0 %vm1871_vm4, %v2514_v49  ;;  %v3842_v63 = vsel %vm1875_vm3, %v3828_v56, 0  ;;  %v3831_v4 = vpack.i.b16 %v3830_v52, %v3829_v60  ;;  %v3835_v0 = vshrl.u32 %v3800_v61, 16  ;;  %v3834_v2 = vpack.i.b16 %v3825_v58, %v3800_v61 }
 0x5c1   : > { %5819 = vmatpush3.bf16.msra.mxu1 %v3842_v63  ;;  %5826 = vmatprep.mubr.msk.bf16.mxu0 %vm6246_vm2, %v6245_v18 }
 0x5c2   : > { %v3888_v1 = vsel %vm1875_vm3, %v3831_v4, 0  ;;  %5830 = vmatprep.subr.bf16.mxu1 %v6245_v18  ;;  %v3837_v50 = vpack.i.b16 %v3836_v5, %v3835_v0  ;;  %v3934_v8 = vsel %vm1875_vm3, %v3834_v2, 0 }
 0x5c3   : > { %5825 = vmatpush3.bf16.msra.mxu0 %v3888_v1 }
 0x5c4   : > { %5836 = vmatprep.subr.bf16.mxu0 %v6245_v18  ;;  %v3980_v12 = vsel %vm1875_vm3, %v3837_v50, 0 }
 0x5c6   : > { %5821 = vmatmul.mubr.msk.bf16.vlgmr.msra.gmra.mxu1 %vm1871_vm4, %v3410_v30 }
 0x5c7   : > { %5831 = vmatpush3.bf16.msra.mxu1 %v3934_v8  ;;  %5832 = vmatprep.mubr.msk.bf16.mxu1 %vm6246_vm2, %v6245_v18 }
 0x5c8   : > { %5827 = vmatmul.mubr.msk.bf16.vlgmr.msra.gmra.mxu0 %vm1871_vm4, %v3413_v9  ;;  %5842 = vmatprep.subr.bf16.mxu1 %v6245_v18 }
 0x5c9   : > { %5837 = vmatpush3.bf16.msra.mxu0 %v3980_v12  ;;  %v3274_v15 = vpop.permute.xlu1 %3273  ;;  %5838 = vmatprep.mubr.msk.bf16.mxu0 %vm6246_vm2, %v6245_v18 }
 0x5ca   : > { %5848 = vmatprep.subr.bf16.mxu0 %v6245_v18 }
 0x5cc   : > { %v3277_v19 = vpop.permute.xlu0 %3276 }
 0x5cd   : > { %v3282_v22 = vcombine.low %v6692_v59, %v3277_v19  ;;  %v3283_v23 = vcombine.high %v6692_v59, %v3277_v19  ;;  %v3280_v44 = vpop.permute.xlu1 %3279 }
 0x5ce   : > { %v3298_v27 = vcombine.low %v3274_v15, %v3280_v44  ;;  %v3299_v29 = vcombine.high %v3274_v15, %v3280_v44  ;;  %5833 = vmatmul.mubr.msk.bf16.vlgmr.msra.gmra.mxu1 %vm1871_vm4, %v3416_v20 }
 0x5cf   : > { %v3290_v57 = vrot.slane %v3282_v22, %v6694_v6  ;;  %5844 = vmatprep.mubr.msk.bf16.mxu1 %vm6246_vm2, %v6245_v18  ;;  %v3297_v31 = vrot.slane %v3283_v23, %v6694_v6 }
 0x5d0   : > { %v3306_v32 = vrot.slane %v3298_v27, %v6694_v6  ;;  %v3313_v26 = vrot.slane %v3299_v29, %v6694_v6  ;;  %5839 = vmatmul.mubr.msk.bf16.vlgmr.msra.gmra.mxu0 %vm1871_vm4, %v3419_v54 }
 0x5d1   : > { %5850 = vmatprep.mubr.msk.bf16.mxu0 %vm6246_vm2, %v6245_v18 }
 0x5d2   : > { %v3314_v59 = vcombine.low %v3290_v57, %v3306_v32  ;;  %v3315_v33 = vcombine.high %v3290_v57, %v3306_v32  ;;  %v3330_v36 = vcombine.low %v3297_v31, %v3313_v26  ;;  %v3331_v41 = vcombine.high %v3297_v31, %v3313_v26 }
 0x5d4   : > { %v3322_v34 = vrot.slane %v3314_v59, %v6696_v13  ;;  %v3329_v35 = vrot.slane %v3315_v33, %v6696_v13  ;;  %v3338_v40 = vrot.slane %v3330_v36, %v6696_v13  ;;  %v3345_v46 = vrot.slane %v3331_v41, %v6696_v13 }
 0x5d6   : > { %v3350_v39 = vpack.c.bf16 %v3322_v34, %v3322_v34  ;;  %v3346_v51 = vcombine.high %v3322_v34, %v6245_v18  ;;  %v3347_v38 = vcombine.high %v3329_v35, %v6245_v18  ;;  %v3352_v43 = vpack.c.bf16 %v3329_v35, %v3329_v35 }
 0x5d7   : > { %v3348_v45 = vcombine.high %v3338_v40, %v6245_v18  ;;  %v3354_v47 = vpack.c.bf16 %v3338_v40, %v3338_v40  ;;  %v3349_v49 = vcombine.high %v3345_v46, %v6245_v18  ;;  %v3356_v52 = vpack.c.bf16 %v3345_v46, %v3345_v46 }
 0x5d8   : > { %4062 = vxpose.xlu0.c.b16.start.end [1/1] (short) (narrow) %v3350_v39, 16  ;;  %v3351_v37 = vpack.c.bf16 %v3346_v51, %v3346_v51  ;;  %v3353_v55 = vpack.c.bf16 %v3347_v38, %v3347_v38 }
 0x5d9   : > { %v3355_v48 = vpack.c.bf16 %v3348_v45, %v3348_v45  ;;  %v3357_v53 = vpack.c.bf16 %v3349_v49, %v3349_v49 }
 0x5da   : > { %4078 = vxpose.xlu1.c.b16.start.end [1/1] (short) (narrow) %v3351_v37, 16 }
 0x5dc   : > { %4094 = vxpose.xlu0.c.b16.start.end [1/1] (short) (narrow) %v3352_v43, 16 }
 0x5de   : > { %4110 = vxpose.xlu1.c.b16.start.end [1/1] (short) (narrow) %v3353_v55, 16 }
 0x5e0   : > { %4126 = vxpose.xlu0.c.b16.start.end [1/1] (short) (narrow) %v3354_v47, 16 }
 0x5e2   : > { %4142 = vxpose.xlu1.c.b16.start.end [1/1] (short) (narrow) %v3355_v48, 16 }
 0x5e4   : > { %4158 = vxpose.xlu0.c.b16.start.end [1/1] (short) (narrow) %v3356_v52, 16 }
 0x5e6   : > { %4174 = vxpose.xlu1.c.b16.start.end [1/1] (short) (narrow) %v3357_v53, 16 }
 0x63a   : > { %v4070_v56 = vpop.trf.xlu0 }
 0x63c   : > { %v4086_v60 = vpop.trf.xlu1 }
 0x63e   : > { %v4102_v61 = vpop.trf.xlu0 }
 0x640   : > { %v4118_v58 = vpop.trf.xlu1 }
 0x642   : > { %v4134_v62 = vpop.trf.xlu0 }
 0x643   : > { %v4190_v63 = vcombine.low %v4070_v56, %v4134_v62 }
 0x644   : > { %v4150_v4 = vpop.trf.xlu1 }
 0x645   : > { %v4224_v0 = vcombine.low %v4086_v60, %v4150_v4  ;;  %v4197_v2 = vrot.slane %v4190_v63, %v6694_v6 }
 0x646   : > { %v4166_v1 = vpop.trf.xlu0 }
 0x647   : > { %v4198_v3 = vcombine.low %v4102_v61, %v4166_v1  ;;  %v4231_v7 = vrot.slane %v4224_v0, %v6694_v6 }
 0x648   : > { %v4182_v5 = vpop.trf.xlu1 }
 0x649   : > { %v7003_v30 = vpop.f32.mrf.mxu1  ;;  %v4205_v50 = vrot.slane %v4198_v3, %v6694_v6  ;;  %v4232_v8 = vcombine.low %v4118_v58, %v4182_v5 }
 0x64b   : > { %v5798_v9 = vpop.f32.mrf.mxu1  ;;  %v7007_v10 = vpop.f32.mrf.mxu0  ;;  %v4206_v12 = vcombine.low %v4197_v2, %v4205_v50  ;;  %v4207_v14 = vcombine.high %v4197_v2, %v4205_v50  ;;  %v4239_v15 = vrot.slane %v4232_v8, %v6694_v6 }
 0x64d   : > { %v2558_v17 = vpop.f32.mrf.mxu1  ;;  %v5804_v19 = vpop.f32.mrf.mxu0  ;;  %v7011_v20 = vrot.slane %v4207_v14, %v6696_v13  ;;  %v4240_v21 = vcombine.low %v4231_v7, %v4239_v15  ;;  %v4241_v22 = vcombine.high %v4231_v7, %v4239_v15  ;;  %v4214_v23 = vrot.slane %v4206_v12, %v6696_v13 }
 0x64f   : > { %v5799_v44 = vpop.f32.mrf.mxu1  ;;  %v2604_v27 = vpop.f32.mrf.mxu0  ;;  %v4255_v29 = vrot.slane %v4241_v22, %v6696_v13  ;;  %v4248_v54 = vrot.slane %v4240_v21, %v6696_v13  ;;  %v4262_v57 = vshrl.u32 %v4214_v23, 16  ;;  %v4222_v31 = vcombine.high %v4214_v23, %v6252_v11 }
 0x650   : > { %v4278_v32 = vshrl.u32 %v7011_v20, 16  ;;  %v4223_v26 = vcombine.high %v7011_v20, %v6252_v11 }
 0x651   : > { %v5805_v59 = vpop.f32.mrf.mxu0  ;;  %v4260_v33 = vpack.i.b16 %v4248_v54, %v4214_v23  ;;  %v4263_v34 = vshrl.u32 %v4248_v54, 16  ;;  %v4256_v35 = vcombine.high %v4248_v54, %v6252_v11  ;;  %v4270_v36 = vshrl.u32 %v4222_v31, 16 }
 0x652   : > { %v4279_v39 = vshrl.u32 %v4255_v29, 16  ;;  %v4276_v51 = vpack.i.b16 %v4255_v29, %v7011_v20  ;;  %v4257_v37 = vcombine.high %v4255_v29, %v6252_v11  ;;  %v4286_v38 = vshrl.u32 %v4223_v26, 16 }
 0x653   : > { %4290 = vxpose.xlu0.c.b16.start.end [1/1] (short) (narrow) %v4260_v33, 16  ;;  %v4264_v40 = vpack.i.b16 %v4263_v34, %v4262_v57  ;;  %v4268_v41 = vpack.i.b16 %v4256_v35, %v4222_v31  ;;  %v4271_v43 = vshrl.u32 %v4256_v35, 16  ;;  %v2081_v57 = vsel %vm1871_vm4, %v6891_v25, 0.0 }
 0x654   : > { %v4280_v55 = vpack.i.b16 %v4279_v39, %v4278_v32  ;;  %v4287_v45 = vshrl.u32 %v4257_v37, 16  ;;  %v4284_v46 = vpack.i.b16 %v4257_v37, %v4223_v26  ;;  %v2087_v31 = vsel %vm1871_vm4, %v6931_v16, 0.0 }
 0x655   : > { %4306 = vxpose.xlu1.c.b16.start.end [1/1] (short) (narrow) %v4264_v40, 16  ;;  %v4272_v47 = vpack.i.b16 %v4271_v43, %v4270_v36  ;;  %v2084_v25 = vsel %vm1871_vm4, %v6899_v28, 0.0 }
 0x656   : > { %v4288_v48 = vpack.i.b16 %v4287_v45, %v4286_v38 }
 0x657   : > { %4322 = vxpose.xlu0.c.b16.start.end [1/1] (short) (narrow) %v4268_v41, 16 }
 0x659   : > { %4338 = vxpose.xlu1.c.b16.start.end [1/1] (short) (narrow) %v4272_v47, 16 }
 0x67e   : > { %v7023_v49 = vpop.f32.mrf.mxu1 }
 0x680   : > { %v5810_v52 = vpop.f32.mrf.mxu1  ;;  %v7025_v53 = vpop.f32.mrf.mxu0 }
 0x682   : > { %v2650_v56 = vpop.f32.mrf.mxu1  ;;  %v5816_v60 = vpop.f32.mrf.mxu0 }
 0x684   : > { %v5811_v61 = vpop.f32.mrf.mxu1  ;;  %v2696_v58 = vpop.f32.mrf.mxu0 }
 0x686   : > { %v5817_v62 = vpop.f32.mrf.mxu0  ;;  %v3878_v63 = vpop.f32.mrf.mxu1 }
 0x687   : > { %v3879_v4 = vadd.f32 %v3878_v63, %v6841_v42 }
 0x688   : > { %v5822_v0 = vpop.f32.mrf.mxu1  ;;  %v3924_v1 = vpop.f32.mrf.mxu0 }
 0x689   : > { %v3925_v2 = vadd.f32 %v3924_v1, %v6841_v42  ;;  %v4022_v3 = vsel %vm1871_vm4, %v3879_v4, -inf }
 0x68a   : > { %v3881_v5 = vpop.f32.mrf.mxu1  ;;  %4023 = vmax.xlane.f32.xlu1 %v4022_v3  ;;  %v5828_v7 = vpop.f32.mrf.mxu0 }
 0x68b   : > { %v4025_v50 = vsel %vm1871_vm4, %v3925_v2, -inf }
 0x68c   : > { %v5823_v8 = vpop.f32.mrf.mxu1  ;;  %4026 = vmax.xlane.f32.xlu0 %v4025_v50  ;;  %v3927_v9 = vpop.f32.mrf.mxu0 }
 0x68e   : > { %v5829_v12 = vpop.f32.mrf.mxu0  ;;  %v3970_v14 = vpop.f32.mrf.mxu1 }
 0x68f   : > { %v3971_v27 = vadd.f32 %v3970_v14, %v6841_v42 }
 0x690   : > { %v5834_v15 = vpop.f32.mrf.mxu1  ;;  %v4016_v17 = vpop.f32.mrf.mxu0 }
 0x691   : > { %v4017_v44 = vadd.f32 %v4016_v17, %v6841_v42  ;;  %v4028_v54 = vsel %vm1871_vm4, %v3971_v27, -inf }
 0x692   : > { %v3973_v19 = vpop.f32.mrf.mxu1  ;;  %v5840_v20 = vpop.f32.mrf.mxu0 }
 0x693   : > { %v4031_v29 = vsel %vm1871_vm4, %v4017_v44, -inf }
 0x694   : > { %v5835_v21 = vpop.f32.mrf.mxu1  ;;  %v4019_v22 = vpop.f32.mrf.mxu0 }
 0x696   : > { %v5841_v23 = vpop.f32.mrf.mxu0 }
 0x6b5   : > { %v4298_v42 = vpop.trf.xlu0 }
 0x6b7   : > { %4370 = vxpose.xlu1.c.b16.start.end [1/1] (short) (narrow) %v4280_v55, 16  ;;  %v4314_v32 = vpop.trf.xlu1 }
 0x6b9   : > { %4354 = vxpose.xlu0.c.b16.start.end [1/1] (short) (narrow) %v4276_v51, 16  ;;  %v4330_v59 = vpop.trf.xlu0 }
 0x6bb   : > { %v4346_v26 = vpop.trf.xlu1 }
 0x6c4   : > { %4032 = vmax.xlane.f32.xlu1 %v4031_v29 }
 0x6c6   : > { %4029 = vmax.xlane.f32.xlu0 %v4028_v54 }
 0x6f1   : > { %4402 = vxpose.xlu1.c.b16.start.end [1/1] (short) (narrow) %v4288_v48, 16 }
 0x6f3   : > { %4386 = vxpose.xlu0.c.b16.start.end [1/1] (short) (narrow) %v4284_v46, 16 }
 0x6fb   : > { %2699 = vxpose.xlu1.b32.start.end [1/1] (short) (narrow) %v7003_v30, 8  ;;  %v2090_v30 = vsel %vm1871_vm4, %v6936_v24, 0.0 }
 0x700   : > { %2082 = vadd.xlane.f32.xlu0 %v2081_v57 }
 0x704   : > { %2088 = vadd.xlane.f32.xlu0 %v2087_v31 }
 0x713   : > { %v4024_v33 = vpop.xlane.xlu1 %4023 }
 0x714   : > { %v4034_v34 = vsub.f32 %v3879_v4, %v4024_v33 }
 0x715   : > { %v4027_v35 = vpop.xlane.xlu0 %4026 }
 0x716   : > { %v4038_v36 = vmul.f32 1.442695, %v4034_v34  ;;  %v4035_v39 = vsub.f32 %v3925_v2, %v4027_v35 }
 0x718   : > { %6025 = vpow2.f32 %v4038_v36  ;;  %v4040_v51 = vmul.f32 1.442695, %v4035_v39 }
 0x719   : > { %5982 = vset.pattern.permute.xlu1 %v6252_v11  ;;  %v4378_v24 = vpop.trf.xlu1 }
 0x71a   : > { %6027 = vpow2.f32 %v4040_v51  ;;  %v4443_v48 = vcombine.low %v4314_v32, %v4378_v24 }
 0x71b   : > { %v4362_v55 = vpop.trf.xlu0 }
 0x71c   : > { %v4418_v60 = vcombine.low %v4298_v42, %v4362_v55  ;;  %v4450_v62 = vrot.slane %v4443_v48, %v6694_v6 }
 0x71e   : > { %v4425_v0 = vrot.slane %v4418_v60, %v6694_v6 }
 0x722   : > { %2085 = vadd.xlane.f32.xlu1 %v2084_v25 }
 0x725   : > { %v6026_v16 = vpop.eup %6025 }
 0x726   : > { %2091 = vadd.xlane.f32.xlu1 %v2090_v30  ;;  %v4046_v37 = vsel %vm1871_vm4, %v6026_v16, 0.0  ;;  %v4058_v38 = vpack.c.bf16 %v6026_v16, %v6026_v16 }
 0x727   : > { %v7046_v40 = vpop.eup %6027  ;;  %4047 = vadd.xlane.f32.xlu0 %v4046_v37 }
 0x728   : > { %v4484_v41 = vsel %vm1871_vm4, %v4058_v38, 0  ;;  %v4059_v43 = vpack.c.bf16 %v7046_v40, %v7046_v40 }
 0x729   : > { %5843 = vmatpush3.bf16.xpose.msra.mxu1 %v4484_v41 }
 0x72a   : > { %v4530_v28 = vsel %vm1871_vm4, %v4059_v43, 0  ;;  %5854 = vmatprep.subr.bf16.mxu1 %v6245_v18 }
 0x72b   : > { %5849 = vmatpush3.bf16.xpose.msra.mxu0 %v4530_v28 }
 0x72c   : > { %5860 = vmatprep.subr.bf16.mxu0 %v6245_v18 }
 0x74d   : > { %v4033_v45 = vpop.xlane.xlu1 %4032 }
 0x74e   : > { %v4037_v46 = vsub.f32 %v4017_v44, %v4033_v45  ;;  %v4049_v45 = vsel %vm1871_vm4, %v7046_v40, 0.0 }
 0x74f   : > { %v4030_v47 = vpop.xlane.xlu0 %4029 }
 0x750   : > { %v4044_v52 = vmul.f32 1.442695, %v4037_v46  ;;  %v4036_v56 = vsub.f32 %v3971_v27, %v4030_v47 }
 0x752   : > { %6029 = vpow2.f32 %v4044_v52  ;;  %v4042_v61 = vmul.f32 1.442695, %v4036_v56 }
 0x753   : > { %v4410_v58 = vpop.trf.xlu1 }
 0x754   : > { %6031 = vpow2.f32 %v4042_v61  ;;  %v4451_v63 = vcombine.low %v4346_v26, %v4410_v58 }
 0x755   : > { %v4394_v4 = vpop.trf.xlu0 }
 0x756   : > { %v4426_v1 = vcombine.low %v4330_v59, %v4394_v4  ;;  %v4458_v2 = vrot.slane %v4451_v63, %v6694_v6 }
 0x758   : > { %v4433_v3 = vrot.slane %v4426_v1, %v6694_v6  ;;  %v4459_v5 = vcombine.low %v4450_v62, %v4458_v2 }
 0x75a   : > { %v4434_v7 = vcombine.low %v4425_v0, %v4433_v3  ;;  %v4466_v50 = vrot.slane %v4459_v5, %v6696_v13 }
 0x75c   : > { %v4441_v8 = vrot.slane %v4434_v7, %v6696_v13  ;;  %v4472_v9 = vshrl.u32 %v4466_v50, 16  ;;  %v4467_v12 = vcombine.high %v4466_v50, %v6252_v11 }
 0x75e   : > { %v4442_v14 = vcombine.high %v4441_v8, %v6252_v11  ;;  %v4471_v15 = vshrl.u32 %v4441_v8, 16  ;;  %v4470_v17 = vpack.i.b16 %v4466_v50, %v4441_v8  ;;  %v4478_v23 = vshrl.u32 %v4467_v12, 16 }
 0x75f   : > { %v6030_v19 = vpop.eup %6029 }
 0x760   : > { %v4473_v20 = vpack.i.b16 %v4472_v9, %v4471_v15  ;;  %v4061_v21 = vpack.c.bf16 %v6030_v19, %v6030_v19  ;;  %5845 = vmatmul.mubr.msk.bf16.vlgmr.msra.gmra.mxu1 %vm1871_vm4, %v4470_v17  ;;  %v4477_v44 = vshrl.u32 %v4442_v14, 16  ;;  %v4476_v32 = vpack.i.b16 %v4467_v12, %v4442_v14 }
 0x761   : > { %v6032_v22 = vpop.eup %6031  ;;  %5856 = vmatprep.mubr.msk.bf16.mxu1 %vm6246_vm2, %v6245_v18  ;;  %v4055_v46 = vsel %vm1871_vm4, %v6030_v19, 0.0 }
 0x762   : > { %v4052_v27 = vsel %vm1871_vm4, %v6032_v22, 0.0  ;;  %5851 = vmatmul.mubr.msk.bf16.vlgmr.msra.gmra.mxu0 %vm1871_vm4, %v4473_v20  ;;  %v4622_v29 = vsel %vm1871_vm4, %v4061_v21, 0  ;;  %v4060_v54 = vpack.c.bf16 %v6032_v22, %v6032_v22  ;;  %v4479_v31 = vpack.i.b16 %v4478_v23, %v4477_v44 }
 0x763   : > { %4053 = vadd.xlane.f32.xlu0 %v4052_v27  ;;  %5861 = vmatpush3.bf16.xpose.msra.mxu0 %v4622_v29 }
 0x764   : > { %v4576_v57 = vsel %vm1871_vm4, %v4060_v54, 0  ;;  %5862 = vmatprep.mubr.msk.bf16.mxu0 %vm6246_vm2, %v6245_v18  ;;  %5874 = vmatprep.subr.bf16.mxu0 %v6245_v18 }
 0x765   : > { %5855 = vmatpush3.bf16.xpose.msra.mxu1 %v4576_v57 }
 0x766   : > { %5866 = vmatprep.subr.bf16.mxu1 %v6245_v18 }
 0x76a   : > { %5863 = vmatmul.mubr.msk.bf16.vlgmr.msra.gmra.mxu0 %vm1871_vm4, %v4479_v31 }
 0x76b   : > { %5878 = vmatprep.mubr.msk.bf16.mxu0 %vm6246_vm2, %v6245_v18 }
 0x76c   : > { %5857 = vmatmul.mubr.msk.bf16.vlgmr.msra.gmra.mxu1 %vm1871_vm4, %v4476_v32 }
 0x76d   : > { %5870 = vmatprep.mubr.msk.bf16.mxu1 %vm6246_vm2, %v6245_v18 }
 0x777   : > { %v7082_v35 = vpop.trf.xlu1 }
 0x789   : > { %v2083_v42 = vpop.xlane.xlu0 %2082 }
 0x78a   : > { %6033 = vrcp.f32 %v2083_v42 }
 0x78d   : > { %v2089_v26 = vpop.xlane.xlu0 %2088 }
 0x78e   : > { %6035 = vrcp.f32 %v2089_v26 }
 0x790   : > { %2731 = vxpose.xlu0.b32.start.end [1/1] (short) (narrow) %v7007_v10, 8 }
 0x794   : > { %2763 = vxpose.xlu0.b32.start.end [1/1] (short) (narrow) %v7023_v49, 8 }
 0x797   : > { %v6034_v59 = vpop.eup %6033 }
 0x798   : > { %2795 = vxpose.xlu0.b32.start.end [1/1] (short) (narrow) %v7025_v53, 8 }
 0x79b   : > { %v6036_v33 = vpop.eup %6035 }
 0x79c   : > { %v2900_v34 = vcombine.high %v6034_v59, %v6036_v33  ;;  %v2899_v25 = vcombine.low %v6034_v59, %v6036_v33 }
 0x79e   : > { %v2907_v10 = vrot.slane %v2899_v25, %v6694_v6  ;;  %v2914_v53 = vrot.slane %v2900_v34, %v6694_v6 }
 0x7ab   : > { %v2086_v36 = vpop.xlane.xlu1 %2085 }
 0x7ac   : > { %6037 = vrcp.f32 %v2086_v36 }
 0x7af   : > { %v2092_v39 = vpop.xlane.xlu1 %2091 }
 0x7b0   : > { %6039 = vrcp.f32 %v2092_v39  ;;  %v4048_v15 = vpop.xlane.xlu0 %4047 }
 0x7b9   : > { %v6038_v51 = vpop.eup %6037 }
 0x7bd   : > { %v6040_v16 = vpop.eup %6039 }
 0x7be   : > { %v2915_v30 = vcombine.low %v6038_v51, %v6040_v16  ;;  %v2916_v37 = vcombine.high %v6038_v51, %v6040_v16 }
 0x7c0   : > { %v2923_v49 = vrot.slane %v2915_v30, %v6694_v6  ;;  %v2930_v38 = vrot.slane %v2916_v37, %v6694_v6 }
 0x7c1   : > { %5983 = vset.pattern.permute.xlu0 %v6252_v11 }
 0x7c2   : > { %v2931_v41 = vcombine.low %v2907_v10, %v2923_v49  ;;  %v2947_v43 = vcombine.low %v2914_v53, %v2930_v38  ;;  %v2948_v28 = vcombine.high %v2914_v53, %v2930_v38  ;;  %v2932_v47 = vcombine.high %v2907_v10, %v2923_v49 }
 0x7c4   : > { %v2939_v24 = vrot.slane %v2931_v41, %v6696_v13  ;;  %v2946_v48 = vrot.slane %v2932_v47, %v6696_v13  ;;  %v2955_v52 = vrot.slane %v2947_v43, %v6696_v13  ;;  %v2962_v60 = vrot.slane %v2948_v28, %v6696_v13 }
 0x7c6   : > { %2969 = vperm.xlu0 %5983, %v2939_v24   ;;  %v2963_v55 = vcombine.high %v2939_v24, %v6245_v18  ;;  %v2964_v11 = vcombine.high %v2946_v48, %v6245_v18  ;;  %v2965_v56 = vcombine.high %v2955_v52, %v6245_v18  ;;  %v2966_v40 = vcombine.high %v2962_v60, %v6245_v18 }
 0x7c8   : > { %2974 = vperm.xlu1 %5982, %v2963_v55  }
 0x7ec   : > { %4050 = vadd.xlane.f32.xlu1 %v4049_v45  ;;  %v4054_v17 = vpop.xlane.xlu0 %4053 }
 0x7ed   : > { %6041 = vrcp.f32 %v4054_v17 }
 0x7ee   : > { %6043 = vrcp.f32 %v4048_v15 }
 0x7f0   : > { %4056 = vadd.xlane.f32.xlu1 %v4055_v46 }
 0x7fa   : > { %v6042_v34 = vpop.eup %6041 }
 0x7fb   : > { %v6044_v51 = vpop.eup %6043 }
 0x7fc   : > { %v4864_v10 = vcombine.low %v6044_v51, %v6042_v34  ;;  %v4865_v24 = vcombine.high %v6044_v51, %v6042_v34 }
 0x7fe   : > { %v4872_v47 = vrot.slane %v4864_v10, %v6694_v6 }
 0x801   : > { %2979 = vperm.xlu1 %5982, %v2946_v48  }
 0x805   : > { %2984 = vperm.xlu1 %5982, %v2964_v11  }
 0x809   : > { %2989 = vperm.xlu1 %5982, %v2955_v52  }
 0x80c   : > { %v2747_v19 = vpop.trf.xlu0 }
 0x80d   : > { %2994 = vperm.xlu1 %5982, %v2965_v56  }
 0x810   : > { %v2779_v20 = vpop.trf.xlu0 }
 0x811   : > { %2999 = vperm.xlu1 %5982, %v2962_v60   ;;  %v2827_v29 = vcombine.low %v7082_v35, %v2779_v20  ;;  %v2828_v26 = vcombine.high %v7082_v35, %v2779_v20 }
 0x813   : > { %v2835_v31 = vrot.slane %v2827_v29, %v6694_v6  ;;  %v2842_v25 = vrot.slane %v2828_v26, %v6694_v6 }
 0x814   : > { %v2811_v22 = vpop.trf.xlu0 }
 0x815   : > { %3004 = vperm.xlu1 %5982, %v2966_v40   ;;  %v2843_v44 = vcombine.low %v2747_v19, %v2811_v22  ;;  %v2844_v32 = vcombine.high %v2747_v19, %v2811_v22 }
 0x817   : > { %v2851_v54 = vrot.slane %v2843_v44, %v6694_v6  ;;  %v2858_v36 = vrot.slane %v2844_v32, %v6694_v6 }
 0x819   : > { %v2860_v42 = vcombine.high %v2835_v31, %v2851_v54  ;;  %v2859_v33 = vcombine.low %v2835_v31, %v2851_v54  ;;  %v2875_v53 = vcombine.low %v2842_v25, %v2858_v36  ;;  %v2876_v38 = vcombine.high %v2842_v25, %v2858_v36 }
 0x81b   : > { %v2874_v39 = vrot.slane %v2860_v42, %v6696_v13  ;;  %v2867_v37 = vrot.slane %v2859_v33, %v6696_v13  ;;  %v2883_v52 = vrot.slane %v2875_v53, %v6696_v13  ;;  %v2890_v56 = vrot.slane %v2876_v38, %v6696_v13 }
 0x81d   : > { %v2892_v35 = vcombine.high %v2874_v39, %v6245_v18  ;;  %v2891_v45 = vcombine.high %v2867_v37, %v6245_v18 }
 0x820   : > { %v7100_v61 = vpop.f32.mrf.mxu1 }
 0x822   : > { %v5846_v58 = vpop.f32.mrf.mxu1  ;;  %v7102_v62 = vpop.f32.mrf.mxu0 }
 0x824   : > { %v4523_v63 = vpop.f32.mrf.mxu1  ;;  %v5852_v4 = vpop.f32.mrf.mxu0 }
 0x826   : > { %v5847_v0 = vpop.f32.mrf.mxu1  ;;  %v4569_v1 = vpop.f32.mrf.mxu0 }
 0x828   : > { %v5853_v2 = vpop.f32.mrf.mxu0 }
 0x82a   : > { %v7104_v3 = vpop.f32.mrf.mxu0 }
 0x82c   : > { %v7106_v5 = vpop.f32.mrf.mxu1  ;;  %v5864_v7 = vpop.f32.mrf.mxu0 }
 0x82e   : > { %v5858_v50 = vpop.f32.mrf.mxu1  ;;  %v4661_v8 = vpop.f32.mrf.mxu0 }
 0x82f   : > { %v4879_v50 = vrot.slane %v4865_v24, %v6694_v6 }
 0x830   : > { %v4615_v9 = vpop.f32.mrf.mxu1  ;;  %v5865_v12 = vpop.f32.mrf.mxu0 }
 0x831   : > { %v2893_v9 = vcombine.high %v2883_v52, %v6245_v18  ;;  %v2894_v12 = vcombine.high %v2890_v56, %v6245_v18 }
 0x832   : > { %v5859_v14 = vpop.f32.mrf.mxu1 }
 0x841   : > { %v2970_v55 = vpop.permute.xlu0 %2969 }
 0x842   : > { %v3007_v4 = vmul.f32 %v2970_v55, %v2867_v37 }
 0x843   : > { %v2975_v21 = vpop.permute.xlu1 %2974 }
 0x844   : > { %v3008_v60 = vmul.f32 %v2975_v21, %v2891_v45 }
 0x875   : > { %v4051_v23 = vpop.xlane.xlu1 %4050 }
 0x876   : > { %6045 = vrcp.f32 %v4051_v23 }
 0x879   : > { %v4057_v27 = vpop.xlane.xlu1 %4056 }
 0x87a   : > { %6047 = vrcp.f32 %v4057_v27 }
 0x87d   : > { %v2980_v57 = vpop.permute.xlu1 %2979 }
 0x87e   : > { %v3009_v11 = vmul.f32 %v2980_v57, %v2874_v39 }
 0x880   : > { %v3015_v8 = vcombine.low %v3007_v4, %v3009_v11 }
 0x881   : > { %v2985_v59 = vpop.permute.xlu1 %2984 }
 0x882   : > { %v3010_v46 = vmul.f32 %v2985_v59, %v2892_v35  ;;  %v7133_v27 = vrot.slane %v3015_v8, %v6694_v6 }
 0x883   : > { %v6046_v30 = vpop.eup %6045 }
 0x884   : > { %v3023_v1 = vcombine.low %v3008_v60, %v3010_v46 }
 0x885   : > { %v2990_v16 = vpop.permute.xlu1 %2989 }
 0x886   : > { %v3011_v14 = vmul.f32 %v2990_v16, %v2883_v52  ;;  %v7130_v21 = vrot.slane %v3023_v1, %v6694_v6 }
 0x887   : > { %v6048_v49 = vpop.eup %6047 }
 0x888   : > { %v4880_v41 = vcombine.low %v6046_v30, %v6048_v49  ;;  %v4881_v43 = vcombine.high %v6046_v30, %v6048_v49  ;;  %v3047_v32 = vcombine.low %v7133_v27, %v7130_v21 }
 0x889   : > { %v2995_v28 = vpop.permute.xlu1 %2994 }
 0x88a   : > { %v4888_v48 = vrot.slane %v4880_v41, %v6694_v6  ;;  %v4895_v63 = vrot.slane %v4881_v43, %v6694_v6  ;;  %v3012_v22 = vmul.f32 %v2995_v28, %v2893_v9  ;;  %v7150_v36 = vrot.slane %v3047_v32, %v6696_v13 }
 0x88c   : > { %v4896_v40 = vcombine.low %v4872_v47, %v4888_v48  ;;  %v4897_v58 = vcombine.high %v4872_v47, %v4888_v48  ;;  %v4912_v19 = vcombine.low %v4879_v50, %v4895_v63  ;;  %v4913_v31 = vcombine.high %v4879_v50, %v4895_v63 }
 0x88d   : > { %v3000_v0 = vpop.permute.xlu1 %2999 }
 0x88e   : > { %v3013_v2 = vmul.f32 %v3000_v0, %v2890_v56  ;;  %v4904_v7 = vrot.slane %v4896_v40, %v6696_v13  ;;  %v4911_v17 = vrot.slane %v4897_v58, %v6696_v13  ;;  %v4920_v57 = vrot.slane %v4912_v19, %v6696_v13 }
 0x88f   : > { %v4927_v34 = vrot.slane %v4913_v31, %v6696_v13 }
 0x890   : > { %4934 = vperm.xlu1 %5982, %v4904_v7   ;;  %v4928_v15 = vcombine.high %v4904_v7, %v6245_v18  ;;  %v3031_v23 = vcombine.low %v3011_v14, %v3013_v2  ;;  %v4929_v54 = vcombine.high %v4911_v17, %v6245_v18  ;;  %v4930_v33 = vcombine.high %v4920_v57, %v6245_v18 }
 0x891   : > { %v3005_v20 = vpop.permute.xlu1 %3004  ;;  %v4931_v25 = vcombine.high %v4927_v34, %v6245_v18 }
 0x892   : > { %v3014_v44 = vmul.f32 %v3005_v20, %v2894_v12  ;;  %4939 = vperm.xlu0 %5983, %v4928_v15   ;;  %v7140_v42 = vrot.slane %v3031_v23, %v6694_v6 }
 0x894   : > { %v3039_v29 = vcombine.low %v3012_v22, %v3014_v44  ;;  %4944 = vperm.xlu1 %5982, %v4911_v17  }
 0x896   : > { %v7143_v26 = vrot.slane %v3039_v29, %v6694_v6  ;;  %4949 = vperm.xlu0 %5983, %v4929_v54   ;;  %v3048_v29 = vcombine.high %v7133_v27, %v7130_v21  ;;  %v6005_v54 = vld [vmem:[%s7416_s28 + $0x8] sm:$0xff]   ;;  %s5693_s28 = sshll.u32 %s6374_s0, 8 }
 0x897   : > { %5867 = vmatpush3.bf16.msra.mxu1 %v6005_v54  ;;  %v6006_v27 = vld [vmem:[%s7417_s30] sm:$0xff]   ;;  %s5352_s30 = sshll.u32 %s6616_s4, 4  ;;  %s7267_s30 = int_to_ptr.vmem [resolvable:$true] %s5352_s30 }
 0x898   : > { %v3063_v59 = vcombine.low %v7140_v42, %v7143_v26  ;;  %4954 = vperm.xlu1 %5982, %v4920_v57   ;;  %v3064_v19 = vcombine.high %v7140_v42, %v7143_v26  ;;  %5868 = vmatprep.subr.bf16.mxu1 %v6245_v18  ;;  %v3062_v21 = vrot.slane %v3048_v29, %v6696_v13  ;;  %s6163_s27 = scalar_lea.vmem %s7267_s30, 256 }
 0x899   : > { %p6164_p9 = scmp.ne.s32.totalorder %s7267_s30, %s6163_s27 }
 0x89a   : > { %v7153_v39 = vrot.slane %v3063_v59, %v6696_v13  ;;  %4959 = vperm.xlu0 %5983, %v4930_v33   ;;  %v3078_v42 = vrot.slane %v3064_v19, %v6696_v13 }
 0x89b   : > { %5869 = vmatpush3.bf16.msra.mxu1 %v6006_v27  ;;  %p6165_p4 = pnand %p6164_p9, %p7428_p10 }
 0x89c   : > { %v3079_v51 = vcombine.low %v7150_v36, %v7153_v39  ;;  %4964 = vperm.xlu1 %5982, %v4927_v34   ;;  %5882 = vmatprep.subr.bf16.mxu1 %v6245_v18 }
 0x89d   : > { %p6166_p7 = pneg %p6165_p4 }
 0x89e   : > { %4969 = vperm.xlu0 %5983, %v4931_v25  }
 0x8bc   : > { %4664 = vxpose.xlu0.b32.start.end [1/1] (short) (narrow) %v7100_v61, 8 }
 0x8c0   : > { %4728 = vxpose.xlu0.b32.start.end [1/1] (short) (narrow) %v7106_v5, 8 }
 0x8c5   : > { %4696 = vxpose.xlu1.b32.start.end [1/1] (short) (narrow) %v7102_v62, 8 }
 0x8c9   : > { %4760 = vxpose.xlu1.b32.start.end [1/1] (short) (narrow) %v7104_v3, 8 }
 0x90b   : > { %v4935_v30 = vpop.permute.xlu1 %4934 }
 0x90d   : > { %v4940_v16 = vpop.permute.xlu0 %4939 }
 0x90f   : > { %v4945_v10 = vpop.permute.xlu1 %4944 }
 0x911   : > { %v4950_v37 = vpop.permute.xlu0 %4949 }
 0x913   : > { %v4955_v53 = vpop.permute.xlu1 %4954 }
 0x915   : > { %v4960_v49 = vpop.permute.xlu0 %4959 }
 0x917   : > { %v4965_v41 = vpop.permute.xlu1 %4964 }
 0x919   : > { %v4970_v38 = vpop.permute.xlu0 %4969 }
 0x938   : > { %v4680_v35 = vpop.trf.xlu0 }
 0x93c   : > { %v4744_v28 = vpop.trf.xlu0 }
 0x93d   : > { %v4792_v24 = vcombine.low %v4680_v35, %v4744_v28  ;;  %v4793_v55 = vcombine.high %v4680_v35, %v4744_v28 }
 0x93f   : > { %v4800_v62 = vrot.slane %v4792_v24, %v6694_v6  ;;  %v4807_v3 = vrot.slane %v4793_v55, %v6694_v6  ;;  %v3082_v24 = vcombine.high %v3062_v21, %v3078_v42 }
 0x941   : > { %v4712_v43 = vpop.trf.xlu1 }
 0x945   : > { %v4776_v61 = vpop.trf.xlu1 }
 0x946   : > { %v4808_v45 = vcombine.low %v4712_v43, %v4776_v61  ;;  %v4809_v5 = vcombine.high %v4712_v43, %v4776_v61 }
 0x948   : > { %v4816_v46 = vrot.slane %v4808_v45, %v6694_v6  ;;  %v4823_v47 = vrot.slane %v4809_v5, %v6694_v6 }
 0x94a   : > { %v4824_v48 = vcombine.low %v4800_v62, %v4816_v46  ;;  %v4825_v11 = vcombine.high %v4800_v62, %v4816_v46  ;;  %v4840_v52 = vcombine.low %v4807_v3, %v4823_v47  ;;  %v4841_v56 = vcombine.high %v4807_v3, %v4823_v47 }
 0x94c   : > { %v4832_v60 = vrot.slane %v4824_v48, %v6696_v13  ;;  %v4839_v40 = vrot.slane %v4825_v11, %v6696_v13  ;;  %v4848_v58 = vrot.slane %v4840_v52, %v6696_v13  ;;  %v4855_v63 = vrot.slane %v4841_v56, %v6696_v13 }
 0x94e   : > { %v4856_v4 = vcombine.high %v4832_v60, %v6245_v18  ;;  %v4857_v0 = vcombine.high %v4839_v40, %v6245_v18  ;;  %v4858_v1 = vcombine.high %v4848_v58, %v6245_v18  ;;  %v4859_v2 = vcombine.high %v4855_v63, %v6245_v18 }
 0x94f   : > { %v4972_v7 = vmul.f32 %v4935_v30, %v4832_v60  ;;  %v4974_v50 = vmul.f32 %v4945_v10, %v4839_v40  ;;  %v4976_v8 = vmul.f32 %v4955_v53, %v4848_v58  ;;  %v4978_v9 = vmul.f32 %v4965_v41, %v4855_v63 }
 0x950   : > { %v4973_v12 = vmul.f32 %v4940_v16, %v4856_v4  ;;  %v4975_v14 = vmul.f32 %v4950_v37, %v4857_v0  ;;  %v4977_v15 = vmul.f32 %v4960_v49, %v4858_v1  ;;  %v4979_v17 = vmul.f32 %v4970_v38, %v4859_v2  ;;  %v6053_v0 = vld [vmem:[#allocation2] sm:$0xff] }
 0x951   : > { %v4980_v20 = vcombine.low %v4972_v7, %v4974_v50  ;;  %v4996_v22 = vcombine.low %v4976_v8, %v4978_v9  ;;  %v3081_v10 = vcombine.low %v3062_v21, %v3078_v42  ;;  %v3080_v53 = vcombine.high %v7150_v36, %v7153_v39  ;;  %v5666_v36 = vld [vmem:[%s7419_s15] ss:$0 sm:$0xff]  ;;  %v6054_v9 = vld [vmem:[#allocation2 + $0x8] sm:$0xff]  ;;  %s6167_s15 = sshll.u32 %s6256_s24, 4  ;;  %s6168_s15 = int_to_ptr.vmem [resolvable:$false] %s6167_s15 }
 0x952   : > { %v4988_v23 = vcombine.low %v4973_v12, %v4975_v14  ;;  %v5004_v44 = vcombine.low %v4977_v15, %v4979_v17  ;;  %s6169_s1 = scalar_lea.vmem %s6168_s15, 512  ;;  %p6170_p5 = scmp.lt.s32.totalorder %s7267_s30, %s6168_s15 }
 0x953   : > { %v4987_v57 = vrot.slane %v4980_v20, %v6694_v6  ;;  %v5003_v31 = vrot.slane %v4996_v22, %v6694_v6  ;;  %p6171_p1 = scmp.lt.s32.totalorder %s6169_s1, %s6163_s27 }
 0x954   : > { %v4995_v32 = vrot.slane %v4988_v23, %v6694_v6  ;;  %v5011_v59 = vrot.slane %v5004_v44, %v6694_v6 }
 0x955   : > { %p6172_p12 = por %p6171_p1, %p6170_p5 }
 0x956   : > { %v5013_v26 = vcombine.high %v4987_v57, %v4995_v32  ;;  %v5029_v33 = vcombine.high %v5003_v31, %v5011_v59  ;;  %v5012_v34 = vcombine.low %v4987_v57, %v4995_v32  ;;  %v5028_v25 = vcombine.low %v5003_v31, %v5011_v59  ;;  %v6007_v31 = vld [vmem:[%s718_s26 + $0x8] sm:$0xff]   ;;  %v6008_v32 = vld [vmem:[%s718_s26] sm:$0xff]  }
 0x957   : > { %5875 = vmatpush3.bf16.msra.mxu0 %v6007_v31  ;;  %v6009_v59 = vld [vmem:[%s6608_s12 + $0x18] sm:$0xff]   ;;  %p6173_p0 = pnand %p6172_p12, %p6166_p7 }
 0x958   : > { %v5027_v16 = vrot.slane %v5013_v26, %v6696_v13  ;;  %v5043_v30 = vrot.slane %v5029_v33, %v6696_v13  ;;  %v5020_v37 = vrot.slane %v5012_v34, %v6696_v13  ;;  %v5036_v6 = vrot.slane %v5028_v25, %v6696_v13  ;;  %5876 = vmatprep.subr.bf16.mxu0 %v6245_v18 }
 0x95a   : > { %v5046_v49 = vcombine.low %v5027_v16, %v5043_v30  ;;  %v5045_v38 = vcombine.high %v5020_v37, %v5036_v6  ;;  %v5044_v35 = vcombine.low %v5020_v37, %v5036_v6  ;;  %v5047_v28 = vcombine.high %v5027_v16, %v5043_v30  ;;  %v5670_v30 = vld [vmem:[%s861_s6] ss:$0 sm:$0xff] }
 0x95b   : > { %5877 = vmatpush3.bf16.msra.mxu0 %v6008_v32 }
 0x95c   : > { %v5989_v41 = vpack.i.bf16 %v5046_v49, %v3081_v10  ;;  %v5984_v43 = vpack.i.bf16 %v5045_v38, %v3080_v53  ;;  %v5994_v13 = vpack.i.bf16 %v5047_v28, %v3082_v24  ;;  %v5671_v49 = vld [vmem:[%s864_s16] ss:$0 sm:$0xff]  ;;  %v6011_v28 = vld [vmem:[%s6608_s12 + $0x8] sm:$0xff]  }
 0x95d   : > { %v6012_v24 = vld [vmem:[%s6608_s12] sm:$0xff]  }
 0x95e   : > { %5990 = vrot.lane.b32.xlu1 %v5989_v41, %s6253_s23  ;;  %5985 = vrot.lane.b32.xlu0 %v5984_v43, %s6254_s10  ;;  %v6010_v43 = vld [vmem:[%s6608_s12 + $0x10] sm:$0xff]  }
 0x962   : > { %5995 = vrot.lane.b32.xlu1 %v5994_v13, %s6255_s21  ;;  %v5672_v13 = vld [vmem:[%s867_s29] ss:$0 sm:$0xff]  ;;  %s7424_s29 = sld [smem:[#allocation16_spill]] }
 0x968   : > { %s7427_s0 = sand.u32 1, %s7424_s29  }
 0x969   : > { %s7274_s22 = scalar_lea.sflag [#allocation5], %s7427_s0 }
 0x9d0   : > { %v5991_v55 = vpop.permute.xlu1 %5990  ;;  %v5986_v61 = vpop.permute.xlu0 %5985 }
 0x9d1   : > { %v5988_v45 = vunpack.i.h.bf16 %v5986_v61  ;;  %v5987_v5 = vunpack.i.l.bf16 %v5986_v61  ;;  %v5993_v62 = vunpack.i.h.bf16 %v5991_v55  ;;  %v5992_v3 = vunpack.i.l.bf16 %v5991_v55 }
 0x9d3   : > { %v3095_v46 = vsel %vm1871_vm4, %v3079_v51, %v5987_v5  ;;  %v5060_v47 = vsel %vm1871_vm4, %v5044_v35, %v5988_v45 }
 0x9d4   : > { %v5996_v48 = vpop.permute.xlu1 %5995  ;;  %v3097_v56 = vsel %vm3096_vm5, %v3095_v46, %v5992_v3  ;;  %v5061_v60 = vsel %vm3096_vm5, %v5060_v47, %v5993_v62 }
 0x9d5   : > { %v5998_v11 = vunpack.i.h.bf16 %v5996_v48  ;;  %v5997_v52 = vunpack.i.l.bf16 %v5996_v48  ;;  %v5676_v48 = vld [vmem:[%s875_s11] ss:$0 sm:$0xff]  ;;  %s7426_s11 = sld [smem:[#allocation37_spill]] }
 0x9d7   : > { %v3099_v40 = vsel %vm3098_vm6, %v3097_v56, %v5997_v52  ;;  %v5062_v58 = vsel %vm3098_vm6, %v5061_v60, %v5998_v11 }
 0x9d8   : > { %v5063_v63 = vpack.c.bf16 %v5062_v58, %v3099_v40 }
 0x9da   : > { %5871 = vmatmul.mubr.msk.bf16.vlgmr.msra.gmra.mxu1 %vm889_vm1, %v5063_v63 }
 0x9db   : > { %5890 = vmatprep.mubr.msk.bf16.mxu1 %vm6246_vm2, %v6245_v18  ;;  %5883 = vmatpush3.bf16.msra.mxu1 %v6009_v59  ;;  %s7264_s21 = scalar_lea.hbm %s7426_s11, %s5693_s28 }
 0x9dc   : > { %5884 = vmatprep.subr.bf16.mxu1 %v6245_v18 }
 0x9df   : > { %5885 = vmatpush3.bf16.msra.mxu1 %v6010_v43 }
 0x9e0   : > { %5886 = vmatprep.subr.bf16.mxu1 %v6245_v18 }
 0x9e3   : > { %5887 = vmatpush3.bf16.msra.mxu1 %v6011_v28 }
 0x9e4   : > { %5888 = vmatprep.subr.bf16.mxu1 %v6245_v18 }
 0x9e7   : > { %5889 = vmatpush3.bf16.msra.mxu1 %v6012_v24 }
 0xa9a   : > { %v5124_v39 = vpop.f32.mrf.mxu1 }
 0xa9b   : > { %v5125_v51 = vadd.f32 %v5666_v36, %v5124_v39 }
 0xa9c   : > { %v5872_v4 = vpop.f32.mrf.mxu1 }
 0xa9d   : > { %v7210_v1 = vadd.f32 %v6053_v0, %v5125_v51 }
 0xa9e   : > { %v5127_v2 = vpop.f32.mrf.mxu1 }
 0xa9f   : > { %v5128_v7 = vadd.f32 %v5666_v36, %v5127_v2  ;;  %v5133_v50 = vsel %vm889_vm1, %v7210_v1, 0.0 }
 0xaa0   : > { %5134 = vadd.xlane.f32.xlu1 %v5133_v50  ;;  %v5873_v8 = vpop.f32.mrf.mxu1 }
 0xaa1   : > { %v7214_v12 = vadd.f32 %v6054_v9, %v5128_v7 }
 0xaa3   : > { %v5136_v14 = vsel %vm889_vm1, %v7214_v12, 0.0 }
 0xaa4   : > { %5137 = vadd.xlane.f32.xlu0 %v5136_v14 }
 0xb29   : > { %v5135_v15 = vpop.xlane.xlu1 %5134 }
 0xb2a   : > { %v5139_v17 = vmul.f32 0.03125, %v5135_v15 }
 0xb2c   : > { %v5141_v19 = vsub.f32 %v7210_v1, %v5139_v17 }
 0xb2d   : > { %v5138_v20 = vpop.xlane.xlu0 %5137 }
 0xb2e   : > { %v5140_v22 = vmul.f32 0.03125, %v5138_v20  ;;  %v5143_v23 = vmul.f32 %v5141_v19, %v5141_v19 }
 0xb30   : > { %v5142_v44 = vsub.f32 %v7214_v12, %v5140_v22  ;;  %v5145_v29 = vsel %vm889_vm1, %v5143_v23, 0.0 }
 0xb31   : > { %5146 = vadd.xlane.f32.xlu1 %v5145_v29 }
 0xb32   : > { %v5144_v54 = vmul.f32 %v5142_v44, %v5142_v44 }
 0xb34   : > { %v5148_v57 = vsel %vm889_vm1, %v5144_v54, 0.0 }
 0xb35   : > { %5149 = vadd.xlane.f32.xlu0 %v5148_v57 }
 0xbba   : > { %v5147_v42 = vpop.xlane.xlu1 %5146 }
 0xbbb   : > { %v5151_v26 = vmul.f32 0.03125, %v5147_v42 }
 0xbbd   : > { %v5153_v33 = vadd.f32 1e-05, %v5151_v26 }
 0xbbe   : > { %v5150_v34 = vpop.xlane.xlu0 %5149 }
 0xbbf   : > { %6049 = vrsqrt.f32 %v5153_v33  ;;  %v5152_v25 = vmul.f32 0.03125, %v5150_v34 }
 0xbc1   : > { %v5154_v21 = vadd.f32 1e-05, %v5152_v25 }
 0xbc3   : > { %6051 = vrsqrt.f32 %v5154_v21 }
 0xbcc   : > { %v6050_v27 = vpop.eup %6049 }
 0xbcd   : > { %v5157_v16 = vmul.f32 %v6050_v27, %v5141_v19 }
 0xbcf   : > { %v5166_v10 = vmul.f32 %v5670_v30, %v5157_v16 }
 0xbd0   : > { %v6052_v37 = vpop.eup %6051 }
 0xbd1   : > { %v5158_v6 = vmul.f32 %v6052_v37, %v5142_v44  ;;  %v5175_v38 = vadd.f32 %v5671_v49, %v5166_v10 }
 0xbd3   : > { %v5167_v53 = vmul.f32 %v5670_v30, %v5158_v6 }
 0xbd5   : > { %v5176_v35 = vadd.f32 %v5671_v49, %v5167_v53 }
 0xbd7   : > { %v5177_v41 = vpack.c.bf16 %v5176_v35, %v5175_v38 }
 0xbd9   : > { %5879 = vmatmul.mubr.msk.bf16.vlgmr.msra.gmra.mxu0 %vm889_vm1, %v5177_v41 }
 0xc99   : > { %v5238_v55 = vpop.f32.mrf.mxu0 }
 0xc9a   : > { %v5239_v45 = vadd.f32 %v5672_v13, %v5238_v55 }
 0xc9b   : > { %v5880_v61 = vpop.f32.mrf.mxu0 }
 0xc9c   : > { %v5245_v46 = vmax.f32 %v5239_v45, 0.0 }
 0xc9d   : > { %v5241_v5 = vpop.f32.mrf.mxu0 }
 0xc9e   : > { %v5242_v62 = vadd.f32 %v5672_v13, %v5241_v5 }
 0xc9f   : > { %v5881_v3 = vpop.f32.mrf.mxu0 }
 0xca0   : > { %v5246_v47 = vmax.f32 %v5242_v62, 0.0 }
 0xca2   : > { %v5247_v18 = vpack.c.bf16 %v5246_v47, %v5245_v46 }
 0xca4   : > { %5891 = vmatmul.mubr.msk.bf16.vlgmr.msra.gmra.mxu1 %vm5287_vm7, %v5247_v18 }
 0xd64   : > { %v5325_v11 = vpop.f32.mrf.mxu1 }
 0xd65   : > { %v5326_v52 = vadd.f32 %v5676_v48, %v5325_v11 }
 0xd66   : > { %v5892_v56 = vpop.f32.mrf.mxu1 }
 0xd67   : > { %v5332_v60 = vadd.f32 %v5326_v52, %v7210_v1 }
 0xd68   : > { %v5328_v40 = vpop.f32.mrf.mxu1 }
 0xd69   : > { %5334 = vst.msk [vmem:[#allocation2] sm:$0xff] %vm889_vm1, %v5332_v60  ;;  %5336 = vst.msk [vmem:[%s6616_s4] sm:$0xff] %vm889_vm1, %v5332_v60  ;;  %v5329_v58 = vadd.f32 %v5676_v48, %v5328_v40 }
 0xd6a   : > { %v5893_v63 = vpop.f32.mrf.mxu1 }
 0xd6b   : > { %v5333_v36 = vadd.f32 %v5329_v58, %v7214_v12 }
 0xd6d   : > { %5335 = vst.msk [vmem:[#allocation2 + $0x8] sm:$0xff] %vm889_vm1, %v5333_v36  ;;  %5337 = vst.msk [vmem:[%s6616_s4 + $0x8] sm:$0xff] %vm889_vm1, %v5333_v36 }
 0xd6e   : > { %6176 = shalt.err (!%p6173_p0)
}
 0xd6f   : > { %s6177_s4 = scalar_lea.hbm %s7264_s21, 256  ;;  %s6181_s19 = scalar_lea.hbm %s7426_s11, 512 }
 0xd70   : > { %p6178_p6 = scmp.ne.s32.totalorder %s7264_s21, %s6177_s4  ;;  %p6182_p3 = scmp.lt.s32.totalorder %s7264_s21, %s7426_s11 }
 0xd71   : > { %p6183_p13 = scmp.lt.s32.totalorder %s6181_s19, %s6177_s4 }
 0xd72   : > { %p6179_p2 = pnand %p6178_p6, %p7428_p10 }
 0xd73   : > { %p6184_p8 = por %p6183_p13, %p6182_p3 }
 0xd74   : > { %p6180_p11 = pneg %p6179_p2 }
 0xd76   : > { %p6185_p9 = pnand %p6184_p8, %p6180_p11 }
 0xd78   : > { %6188 = shalt.err (!%p6185_p9)
}
 0xd79   : > { %s6257_s6 = smov 128  }
 0xd7a   : > { %5906 = dma.vmem_to_hbm [thread:$0]  (%p7428_p10), %s7267_s30, 256, %s7264_s21, %s7274_s22, %s6257_s6, %s6257_s6, %s6254_s10  }
 0xd7b PF: > { %s7429_s17 = sld [smem:[#allocation15_spill]] }
 0xd7c   : > { %s7430_s16 = sld [smem:[#allocation22_spill]] }
 0xd7d   : > { %s7431_s12 = sld [smem:[#allocation18_spill]] }
 0xd81   : > { %s5367_s25 = sand.u32 1, %s7429_s17  }
 0xd82   : > { %p7432_p4 = scmp.ne.s32.totalorder %s7430_s16, 0  ;;  %s5368_s8 = scalar_lea.sflag [#allocation5], %s5367_s25 }
 0xd83   : > { %p7433_p7 = scmp.ge.s32.totalorder %s7431_s12, 2 }
 0xd85   : > { %p5923_p5 = pnand %p7433_p7, %p7432_p4 }
 0xd87   : > { %p5924_p1 = pneg %p5923_p5 }
 0xd89   : > { %6218 = dma.done.wait (%p5924_p1), %s5368_s8, 256  }
 0xd8a   : > { %6220 = vsyncadd (%p5924_p1), %s5368_s8, 4294967040  ;;  %s7434_s30 = sld [smem:[#allocation19_spill]] }
 0xd8b   : > { %s7435_s27 = sld [smem:[#allocation16_spill]] }
 0xd8c   : > { %s7436_s28 = sld [smem:[#allocation17_spill]] }
 0xd8d   : > { %s7437_s29 = sld [smem:[#allocation20_spill]] }
 0xd90   : > { %p30_p12 = scmp.ge.s32.totalorder %s7434_s30, 4  }
 0xd92   :  { %32 = sbr.rel (!%p30_p12) target bundleno = 21 (0x15), region = 201 }
 0xd97   :  { %5373 = vsyncpa [#allocation4], 1 }
 0xd98   :  { %5375 = vsyncpa [#allocation4 + $0x1], 1 }
 0xd99   :  { %5376 = vsyncpa [#allocation7], 1 }
 0xd9a   :  { %5377 = vsyncpa [#allocation5], 1 }
 0xd9b   :  { %5379 = vsyncpa [#allocation5 + $0x1], 1 }

</bundles_post_ra>
